<compile_context>
chip_gen: v6e
topology: v6e:2x2x1
jax: 0.10.0
libtpu: 0.0.40
codegen_flags: <defaults>
</compile_context>

<pallas_src>
import functools

import jax
import jax.numpy as jnp
import numpy as np
from jax.experimental import pallas as pl
from jax.experimental.pallas import tpu as pltpu

HIDDEN = 16                       # GCNConv hidden size (conv1: F->16, conv2: 16->16)
VMEM_LIMIT = 32 * 1024 * 1024     # safe on v5e (raises 16 MiB default) / v6e / v7x


def _round_up(x, m):
    return ((x + m - 1) // m) * m


# ---------------------------------------------------------------------------
# Kernel 1: one GCN layer,  out[tile] = A_hat[tile, :] @ (X @ W) + b  (+ReLU)
# Grid: 1-D over node-row tiles ("parallel").  A_hat arrives as bf16 (or f32)
# (TM, N) strips; X / W / b stay VMEM-resident across the grid.
# ---------------------------------------------------------------------------
def gcn_layer_kernel(a_ref, x_ref, w_ref, b_ref, out_ref, *, relu):
    cd = a_ref.dtype                                    # MXU compute dtype
    # X @ W is tiny (N x F x 16); recomputing it per row tile is a few percent
    # of the A_hat @ (XW) work and keeps the whole layer in one kernel.
    xw = jnp.dot(x_ref[...].astype(cd), w_ref[...].astype(cd),
                 preferred_element_type=jnp.float32)    # (N, H) f32
    h = jnp.dot(a_ref[...], xw.astype(cd),
                preferred_element_type=jnp.float32)     # (TM, H) f32 accumulate
    h = h + b_ref[...]                                  # bias / ReLU stay in f32
    if relu:
        h = jnp.maximum(h, 0.0)
    out_ref[...] = h


def gcn_layer(a_hat, x, w, b, *, relu, tm):
    n_pad = a_hat.shape[0]
    fin = x.shape[1]
    hidden = w.shape[1]
    return pl.pallas_call(
        functools.partial(gcn_layer_kernel, relu=relu),
        out_shape=jax.ShapeDtypeStruct((n_pad, hidden), jnp.float32),
        grid_spec=pltpu.PrefetchScalarGridSpec(
            num_scalar_prefetch=0,
            grid=(n_pad // tm,),
            in_specs=[
                pl.BlockSpec((tm, n_pad), lambda i: (i, 0)),      # A_hat row strip
                pl.BlockSpec((n_pad, fin), lambda i: (0, 0)),     # X   (resident)
                pl.BlockSpec((fin, hidden), lambda i: (0, 0)),    # W   (resident)
                pl.BlockSpec((1, hidden), lambda i: (0, 0)),      # b   (resident)
            ],
            out_specs=pl.BlockSpec((tm, hidden), lambda i: (i, 0)),
        ),
        compiler_params=pltpu.CompilerParams(
            dimension_semantics=("parallel",),          # shards grid across TCs on v7x
            vmem_limit_bytes=VMEM_LIMIT,
        ),
    )(a_hat, x, w, b)


# ---------------------------------------------------------------------------
# Kernel 2: fc_edge head, lane-dense over edges.
#   src_t/dst_t : (H, E_pad)  gathered endpoint features, edges on the lane axis
#   w_src/w_dst : (H, OUT),  b : (OUT, 1)
#   out         : (OUT, E_pad) = sum_h src_t*w_src + sum_h dst_t*w_dst + b
# The 16-wide contraction is VPU multiply + XLU sublane reduce (no 1-column
# MXU matmul, no 1-wide masked stores).
# ---------------------------------------------------------------------------
def edge_head_kernel(src_t_ref, dst_t_ref, wsrc_ref, wdst_ref, b_ref, out_ref):
    src_t = src_t_ref[...]                              # (H, TE)
    dst_t = dst_t_ref[...]
    wsrc = wsrc_ref[...]                                # (H, OUT)
    wdst = wdst_ref[...]
    b = b_ref[...]                                      # (OUT, 1)
    out_dim = out_ref.shape[0]
    for o in range(out_dim):                            # static, tiny
        row = (jnp.sum(src_t * wsrc[:, o:o + 1], axis=0, keepdims=True)
               + jnp.sum(dst_t * wdst[:, o:o + 1], axis=0, keepdims=True)
               + b[o, 0])
        out_ref[o:o + 1, :] = row


def edge_head(src_t, dst_t, w_src, w_dst, b_col, *, te):
    hidden, e_pad = src_t.shape
    out_dim = w_src.shape[1]
    return pl.pallas_call(
        edge_head_kernel,
        out_shape=jax.ShapeDtypeStruct((out_dim, e_pad), jnp.float32),
        grid_spec=pltpu.PrefetchScalarGridSpec(
            num_scalar_prefetch=0,
            grid=(e_pad // te,),
            in_specs=[
                pl.BlockSpec((hidden, te), lambda i: (0, i)),
                pl.BlockSpec((hidden, te), lambda i: (0, i)),
                pl.BlockSpec((hidden, out_dim), lambda i: (0, 0)),
                pl.BlockSpec((hidden, out_dim), lambda i: (0, 0)),
                pl.BlockSpec((out_dim, 1), lambda i: (0, 0)),
            ],
            out_specs=pl.BlockSpec((out_dim, te), lambda i: (0, i)),
        ),
        compiler_params=pltpu.CompilerParams(
            dimension_semantics=("parallel",),
            vmem_limit_bytes=VMEM_LIMIT,
        ),
    )(src_t, dst_t, w_src, w_dst, b_col)


def build_norm_adj(edge_index, num_nodes):
    """Dense symmetric-normalized adjacency with self loops (PyG gcn_norm)."""
    src, dst = edge_index[0], edge_index[1]
    a = jnp.zeros((num_nodes, num_nodes), jnp.float32).at[dst, src].add(1.0)
    a = a + jnp.eye(num_nodes, dtype=jnp.float32)       # self loops
    deg = jnp.sum(a, axis=1)                            # in-degree incl. self loop
    dinv = jnp.where(deg > 0, 1.0 / jnp.sqrt(deg), 0.0)
    return dinv[:, None] * a * dinv[None, :]


@functools.partial(jax.jit,
                   static_argnames=("compute_dtype", "node_tile", "edge_tile"))
def edge_gcn_forward(x, edge_index, params, compute_dtype=jnp.bfloat16,
                     node_tile=512, edge_tile=512):
    assert node_tile % 8 == 0 and edge_tile % 128 == 0
    n, _ = x.shape
    e = edge_index.shape[1]

    # -- tile / padding setup (static under jit) --
    tm = min(node_tile, _round_up(n, 8))
    n_pad = _round_up(n, tm)
    te = min(edge_tile, _round_up(e, 128))
    e_pad = _round_up(e, te)

    # -- dense gcn_norm adjacency, padded + cast to the MXU compute dtype --
    a_hat = build_norm_adj(edge_index, n)
    a_hat = jnp.pad(a_hat, ((0, n_pad - n), (0, n_pad - n))).astype(compute_dtype)
    x_p = jnp.pad(x, ((0, n_pad - n), (0, 0)))

    # -- two GCN layers (Pallas, row-tiled) --
    h1 = gcn_layer(a_hat, x_p, params["w1"], params["b1"].reshape(1, -1),
                   relu=True, tm=tm)
    h2 = gcn_layer(a_hat, h1, params["w2"], params["b2"].reshape(1, -1),
                   relu=False, tm=tm)

    # -- endpoint gather: cheap XLA take (replaces O(E*N) one-hot matmuls),
    #    transposed so edges sit on the 128-lane axis for the head kernel --
    src_idx = jnp.pad(edge_index[0], (0, e_pad - e))
    dst_idx = jnp.pad(edge_index[1], (0, e_pad - e))
    src_t = jnp.take(h2, src_idx, axis=0).T             # (H, E_pad)
    dst_t = jnp.take(h2, dst_idx, axis=0).T             # (H, E_pad)

    # -- fc_edge on concat([src, dst]) == src @ We[:H] + dst @ We[H:] + b --
    w_src = params["w_edge"][:HIDDEN, :]
    w_dst = params["w_edge"][HIDDEN:, :]
    b_col = params["b_edge"].reshape(-1, 1)
    out_t = edge_head(src_t, dst_t, w_src, w_dst, b_col, te=te)  # (OUT, E_pad)

    return jnp.squeeze(out_t[:, :e].T)                  # matches torch .squeeze()


def edge_gcn_reference(x, edge_index, params):
    a_hat = build_norm_adj(edge_index, x.shape[0])
    h1 = jax.nn.relu(a_hat @ (x @ params["w1"]) + params["b1"])
    h2 = a_hat @ (h1 @ params["w2"]) + params["b2"]
    emb = jnp.concatenate([h2[edge_index[0]], h2[edge_index[1]]], axis=1)
    return jnp.squeeze(emb @ params["w_edge"] + params["b_edge"])


if __name__ == "__main__":
    key = jax.random.PRNGKey(0)
    num_nodes = 256
    num_node_features = 4
    num_edges = 512
    output_dim = 1

    k = jax.random.split(key, 8)
    x = jax.random.normal(k[0], (num_nodes, num_node_features), jnp.float32)
    src = jax.random.randint(k[1], (num_edges,), 0, num_nodes)
    dst = (src + 1 + jax.random.randint(k[2], (num_edges,), 0, num_nodes - 1)) % num_nodes
    edge_index = jnp.stack([src, dst], axis=0).astype(jnp.int32)   # [2, E]

    params = {
        "w1": jax.random.normal(k[3], (num_node_features, HIDDEN), jnp.float32) * 0.5,
        "b1": jax.random.normal(k[4], (HIDDEN,), jnp.float32) * 0.1,
        "w2": jax.random.normal(k[5], (HIDDEN, HIDDEN), jnp.float32) * 0.25,
        "b2": jax.random.normal(k[6], (HIDDEN,), jnp.float32) * 0.1,
        "w_edge": jax.random.normal(k[7], (2 * HIDDEN, output_dim), jnp.float32) * 0.25,
        "b_edge": jnp.zeros((output_dim,), jnp.float32),
    }

    ref = edge_gcn_reference(x, edge_index, params)

    # Fast path: bf16 adjacency on the MXU, multi-tile grids (node grid = 2,
    # edge grid = 2 at these shapes).
    out_bf16 = edge_gcn_forward(x, edge_index, params,
                                node_tile=128, edge_tile=256)
    out_bf16 = jax.block_until_ready(out_bf16)
    np.testing.assert_allclose(np.asarray(out_bf16), np.asarray(ref),
                               rtol=5e-2, atol=5e-2)

    # Exact path: f32 everywhere, tight tolerance — proves kernel structure.
    out_f32 = edge_gcn_forward(x, edge_index, params,
                               compute_dtype=jnp.float32,
                               node_tile=128, edge_tile=256)
    out_f32 = jax.block_until_ready(out_f32)
    np.testing.assert_allclose(np.asarray(out_f32), np.asarray(ref),
                               rtol=1e-4, atol=1e-4)

    print("KERNEL_OK")
</pallas_src>

<mosaic_0001>
module attributes {stable_mosaic.version = 11 : i64} {
  func.func private @main(%arg0: i32) attributes {dimension_semantics = [#tpu.dimension_semantics<core_parallel>], iteration_bounds = array<i64: 2>, tpu.core_type = #tpu.core_type<sc_scalar_subcore>, window_params = []} {
    return
  }
}

module attributes {stable_mosaic.version = 11 : i64} {
  func.func private @main(%arg0: i32) attributes {dimension_semantics = [#tpu.dimension_semantics<core_parallel>], iteration_bounds = array<i64: 2>, tpu.core_type = #tpu.core_type<sc_scalar_subcore>, window_params = []} {
    return
  }
}

module attributes {stable_mosaic.version = 11 : i64} {
  func.func @gcn_layer_kernel(%arg0: i32, %arg1: memref<128x256xbf16, #tpu.memory_space<vmem>>, %arg2: memref<256x4xf32, #tpu.memory_space<vmem>>, %arg3: memref<4x16xf32, #tpu.memory_space<vmem>>, %arg4: memref<1x16xf32, #tpu.memory_space<vmem>>, %arg5: memref<128x16xf32, #tpu.memory_space<vmem>>) attributes {dimension_semantics = [#tpu.dimension_semantics<parallel>], iteration_bounds = array<i64: 2>, scalar_prefetch = 0 : i64, scratch_operands = 0 : i64, tpu.core_type = #tpu.core_type<tc>, window_params = [{transform_indices = @transform_0, window_bounds = array<i64: 128, 256>}, {pipeline_mode = #tpu.pipeline_mode<synchronous>, transform_indices = @transform_1, window_bounds = array<i64: 256, 4>}, {pipeline_mode = #tpu.pipeline_mode<synchronous>, transform_indices = @transform_2, window_bounds = array<i64: 4, 16>}, {pipeline_mode = #tpu.pipeline_mode<synchronous>, transform_indices = @transform_3, window_bounds = array<i64: 1, 16>}, {transform_indices = @transform_4, window_bounds = array<i64: 128, 16>}]} {
    %c0 = arith.constant 0 : index
    %c0_0 = arith.constant 0 : index
    %0 = vector.load %arg2[%c0, %c0_0] : memref<256x4xf32, #tpu.memory_space<vmem>>, vector<256x4xf32>
    %1 = arith.truncf %0 : vector<256x4xf32> to vector<256x4xbf16>
    %c0_1 = arith.constant 0 : index
    %c0_2 = arith.constant 0 : index
    %2 = vector.load %arg3[%c0_1, %c0_2] : memref<4x16xf32, #tpu.memory_space<vmem>>, vector<4x16xf32>
    %3 = arith.truncf %2 : vector<4x16xf32> to vector<4x16xbf16>
    %cst = arith.constant dense<0.000000e+00> : vector<256x16xf32>
    %4 = tpu.matmul %1, %3, %cst {dimension_numbers = #tpu.dot_dimension_numbers<[1], [0], [0], [1], [0, 0, 1, 1], [], []>} : vector<256x4xbf16>, vector<4x16xbf16>, vector<256x16xf32> -> vector<256x16xf32>
    %c0_3 = arith.constant 0 : index
    %c0_4 = arith.constant 0 : index
    %5 = vector.load %arg1[%c0_3, %c0_4] : memref<128x256xbf16, #tpu.memory_space<vmem>>, vector<128x256xbf16>
    %6 = arith.truncf %4 : vector<256x16xf32> to vector<256x16xbf16>
    %cst_5 = arith.constant dense<0.000000e+00> : vector<128x16xf32>
    %7 = tpu.matmul %5, %6, %cst_5 {dimension_numbers = #tpu.dot_dimension_numbers<[1], [0], [0], [1], [0, 0, 1, 1], [], []>} : vector<128x256xbf16>, vector<256x16xbf16>, vector<128x16xf32> -> vector<128x16xf32>
    %c0_6 = arith.constant 0 : index
    %c0_7 = arith.constant 0 : index
    %8 = vector.load %arg4[%c0_6, %c0_7] : memref<1x16xf32, #tpu.memory_space<vmem>>, vector<1x16xf32>
    %9 = vector.broadcast %8 : vector<1x16xf32> to vector<128x16xf32>
    %10 = arith.addf %7, %9 : vector<128x16xf32>
    %cst_8 = arith.constant 0.000000e+00 : f32
    %11 = vector.broadcast %cst_8 : f32 to vector<128x16xf32>
    %12 = arith.maximumf %10, %11 : vector<128x16xf32>
    %c0_9 = arith.constant 0 : index
    %c0_10 = arith.constant 0 : index
    %13 = vector.load %arg5[%c0_9, %c0_10] : memref<128x16xf32, #tpu.memory_space<vmem>>, vector<128x16xf32>
    tpu.vector_store %arg5[%c0_9, %c0_10], %12 {strides = array<i32>} : memref<128x16xf32, #tpu.memory_space<vmem>>, vector<128x16xf32>,
    return
  }
  func.func @transform_0(%arg0: i32) -> (i32, i32) {
    %c0_i32 = arith.constant 0 : i32
    %c0_i32_0 = arith.constant 0 : i32
    return %arg0, %c0_i32 : i32, i32
  }
  func.func @transform_1(%arg0: i32) -> (i32, i32) {
    %c0_i32 = arith.constant 0 : i32
    %c0_i32_0 = arith.constant 0 : i32
    %c0_i32_1 = arith.constant 0 : i32
    return %c0_i32, %c0_i32_0 : i32, i32
  }
  func.func @transform_2(%arg0: i32) -> (i32, i32) {
    %c0_i32 = arith.constant 0 : i32
    %c0_i32_0 = arith.constant 0 : i32
    %c0_i32_1 = arith.constant 0 : i32
    return %c0_i32, %c0_i32_0 : i32, i32
  }
  func.func @transform_3(%arg0: i32) -> (i32, i32) {
    %c0_i32 = arith.constant 0 : i32
    %c0_i32_0 = arith.constant 0 : i32
    %c0_i32_1 = arith.constant 0 : i32
    return %c0_i32, %c0_i32_0 : i32, i32
  }
  func.func @transform_4(%arg0: i32) -> (i32, i32) {
    %c0_i32 = arith.constant 0 : i32
    %c0_i32_0 = arith.constant 0 : i32
    return %arg0, %c0_i32 : i32, i32
  }
}

module attributes {stable_mosaic.version = 11 : i64} {
  func.func @gcn_layer_kernel(%arg0: i32, %arg1: memref<128x256xbf16, #tpu.memory_space<vmem>>, %arg2: memref<256x16xf32, #tpu.memory_space<vmem>>, %arg3: memref<16x16xf32, #tpu.memory_space<vmem>>, %arg4: memref<1x16xf32, #tpu.memory_space<vmem>>, %arg5: memref<128x16xf32, #tpu.memory_space<vmem>>) attributes {dimension_semantics = [#tpu.dimension_semantics<parallel>], iteration_bounds = array<i64: 2>, scalar_prefetch = 0 : i64, scratch_operands = 0 : i64, tpu.core_type = #tpu.core_type<tc>, window_params = [{transform_indices = @transform_0, window_bounds = array<i64: 128, 256>}, {pipeline_mode = #tpu.pipeline_mode<synchronous>, transform_indices = @transform_1, window_bounds = array<i64: 256, 16>}, {pipeline_mode = #tpu.pipeline_mode<synchronous>, transform_indices = @transform_2, window_bounds = array<i64: 16, 16>}, {pipeline_mode = #tpu.pipeline_mode<synchronous>, transform_indices = @transform_3, window_bounds = array<i64: 1, 16>}, {transform_indices = @transform_4, window_bounds = array<i64: 128, 16>}]} {
    %c0 = arith.constant 0 : index
    %c0_0 = arith.constant 0 : index
    %0 = vector.load %arg2[%c0, %c0_0] : memref<256x16xf32, #tpu.memory_space<vmem>>, vector<256x16xf32>
    %1 = arith.truncf %0 : vector<256x16xf32> to vector<256x16xbf16>
    %c0_1 = arith.constant 0 : index
    %c0_2 = arith.constant 0 : index
    %2 = vector.load %arg3[%c0_1, %c0_2] : memref<16x16xf32, #tpu.memory_space<vmem>>, vector<16x16xf32>
    %3 = arith.truncf %2 : vector<16x16xf32> to vector<16x16xbf16>
    %cst = arith.constant dense<0.000000e+00> : vector<256x16xf32>
    %4 = tpu.matmul %1, %3, %cst {dimension_numbers = #tpu.dot_dimension_numbers<[1], [0], [0], [1], [0, 0, 1, 1], [], []>} : vector<256x16xbf16>, vector<16x16xbf16>, vector<256x16xf32> -> vector<256x16xf32>
    %c0_3 = arith.constant 0 : index
    %c0_4 = arith.constant 0 : index
    %5 = vector.load %arg1[%c0_3, %c0_4] : memref<128x256xbf16, #tpu.memory_space<vmem>>, vector<128x256xbf16>
    %6 = arith.truncf %4 : vector<256x16xf32> to vector<256x16xbf16>
    %cst_5 = arith.constant dense<0.000000e+00> : vector<128x16xf32>
    %7 = tpu.matmul %5, %6, %cst_5 {dimension_numbers = #tpu.dot_dimension_numbers<[1], [0], [0], [1], [0, 0, 1, 1], [], []>} : vector<128x256xbf16>, vector<256x16xbf16>, vector<128x16xf32> -> vector<128x16xf32>
    %c0_6 = arith.constant 0 : index
    %c0_7 = arith.constant 0 : index
    %8 = vector.load %arg4[%c0_6, %c0_7] : memref<1x16xf32, #tpu.memory_space<vmem>>, vector<1x16xf32>
    %9 = vector.broadcast %8 : vector<1x16xf32> to vector<128x16xf32>
    %10 = arith.addf %7, %9 : vector<128x16xf32>
    %c0_8 = arith.constant 0 : index
    %c0_9 = arith.constant 0 : index
    %11 = vector.load %arg5[%c0_8, %c0_9] : memref<128x16xf32, #tpu.memory_space<vmem>>, vector<128x16xf32>
    tpu.vector_store %arg5[%c0_8, %c0_9], %10 {strides = array<i32>} : memref<128x16xf32, #tpu.memory_space<vmem>>, vector<128x16xf32>,
    return
  }
  func.func @transform_0(%arg0: i32) -> (i32, i32) {
    %c0_i32 = arith.constant 0 : i32
    %c0_i32_0 = arith.constant 0 : i32
    return %arg0, %c0_i32 : i32, i32
  }
  func.func @transform_1(%arg0: i32) -> (i32, i32) {
    %c0_i32 = arith.constant 0 : i32
    %c0_i32_0 = arith.constant 0 : i32
    %c0_i32_1 = arith.constant 0 : i32
    return %c0_i32, %c0_i32_0 : i32, i32
  }
  func.func @transform_2(%arg0: i32) -> (i32, i32) {
    %c0_i32 = arith.constant 0 : i32
    %c0_i32_0 = arith.constant 0 : i32
    %c0_i32_1 = arith.constant 0 : i32
    return %c0_i32, %c0_i32_0 : i32, i32
  }
  func.func @transform_3(%arg0: i32) -> (i32, i32) {
    %c0_i32 = arith.constant 0 : i32
    %c0_i32_0 = arith.constant 0 : i32
    %c0_i32_1 = arith.constant 0 : i32
    return %c0_i32, %c0_i32_0 : i32, i32
  }
  func.func @transform_4(%arg0: i32) -> (i32, i32) {
    %c0_i32 = arith.constant 0 : i32
    %c0_i32_0 = arith.constant 0 : i32
    return %arg0, %c0_i32 : i32, i32
  }
}

module attributes {stable_mosaic.version = 11 : i64} {
  func.func @edge_head_kernel(%arg0: i32, %arg1: memref<16x256xf32, #tpu.memory_space<vmem>>, %arg2: memref<16x256xf32, #tpu.memory_space<vmem>>, %arg3: memref<16x1xf32, #tpu.memory_space<vmem>>, %arg4: memref<16x1xf32, #tpu.memory_space<vmem>>, %arg5: memref<1x1xf32, #tpu.memory_space<vmem>>, %arg6: memref<1x256xf32, #tpu.memory_space<vmem>>) attributes {dimension_semantics = [#tpu.dimension_semantics<parallel>], iteration_bounds = array<i64: 2>, scalar_prefetch = 0 : i64, scratch_operands = 0 : i64, tpu.core_type = #tpu.core_type<tc>, window_params = [{transform_indices = @transform_0, window_bounds = array<i64: 16, 256>}, {transform_indices = @transform_1, window_bounds = array<i64: 16, 256>}, {pipeline_mode = #tpu.pipeline_mode<synchronous>, transform_indices = @transform_2, window_bounds = array<i64: 16, 1>}, {pipeline_mode = #tpu.pipeline_mode<synchronous>, transform_indices = @transform_3, window_bounds = array<i64: 16, 1>}, {pipeline_mode = #tpu.pipeline_mode<synchronous>, transform_indices = @transform_4, window_bounds = array<i64: 1, 1>}, {transform_indices = @transform_5, window_bounds = array<i64: 1, 256>}]} {
    %c0 = arith.constant 0 : index
    %c0_0 = arith.constant 0 : index
    %0 = vector.load %arg1[%c0, %c0_0] : memref<16x256xf32, #tpu.memory_space<vmem>>, vector<16x256xf32>
    %c0_1 = arith.constant 0 : index
    %c0_2 = arith.constant 0 : index
    %1 = vector.load %arg2[%c0_1, %c0_2] : memref<16x256xf32, #tpu.memory_space<vmem>>, vector<16x256xf32>
    %c0_3 = arith.constant 0 : index
    %c0_4 = arith.constant 0 : index
    %2 = vector.load %arg3[%c0_3, %c0_4] : memref<16x1xf32, #tpu.memory_space<vmem>>, vector<16x1xf32>
    %c0_5 = arith.constant 0 : index
    %c0_6 = arith.constant 0 : index
    %3 = vector.load %arg4[%c0_5, %c0_6] : memref<16x1xf32, #tpu.memory_space<vmem>>, vector<16x1xf32>
    %c0_7 = arith.constant 0 : index
    %c0_8 = arith.constant 0 : index
    %4 = vector.load %arg5[%c0_7, %c0_8] : memref<1x1xf32, #tpu.memory_space<vmem>>, vector<1x1xf32>
    %5 = vector.broadcast %2 : vector<16x1xf32> to vector<16x256xf32>
    %6 = arith.mulf %0, %5 : vector<16x256xf32>
    %cst = arith.constant dense<0.000000e+00> : vector<256xf32>
    %7 = vector.multi_reduction <add>, %6, %cst [0] : vector<16x256xf32> to vector<256xf32>
    %8 = vector.shape_cast %7 : vector<256xf32> to vector<1x256xf32>
    %9 = vector.broadcast %3 : vector<16x1xf32> to vector<16x256xf32>
    %10 = arith.mulf %1, %9 : vector<16x256xf32>
    %cst_9 = arith.constant dense<0.000000e+00> : vector<256xf32>
    %11 = vector.multi_reduction <add>, %10, %cst_9 [0] : vector<16x256xf32> to vector<256xf32>
    %12 = vector.shape_cast %11 : vector<256xf32> to vector<1x256xf32>
    %13 = arith.addf %8, %12 : vector<1x256xf32>
    %14 = vector.extract %4[0, 0] : f32 from vector<1x1xf32>
    %15 = vector.broadcast %14 : f32 to vector<1x256xf32>
    %16 = arith.addf %13, %15 : vector<1x256xf32>
    %c0_10 = arith.constant 0 : index
    %c0_11 = arith.constant 0 : index
    %17 = vector.load %arg6[%c0_10, %c0_11] : memref<1x256xf32, #tpu.memory_space<vmem>>, vector<1x256xf32>
    tpu.vector_store %arg6[%c0_10, %c0_11], %16 {strides = array<i32>} : memref<1x256xf32, #tpu.memory_space<vmem>>, vector<1x256xf32>,
    return
  }
  func.func @transform_0(%arg0: i32) -> (i32, i32) {
    %c0_i32 = arith.constant 0 : i32
    %c0_i32_0 = arith.constant 0 : i32
    return %c0_i32, %arg0 : i32, i32
  }
  func.func @transform_1(%arg0: i32) -> (i32, i32) {
    %c0_i32 = arith.constant 0 : i32
    %c0_i32_0 = arith.constant 0 : i32
    return %c0_i32, %arg0 : i32, i32
  }
  func.func @transform_2(%arg0: i32) -> (i32, i32) {
    %c0_i32 = arith.constant 0 : i32
    %c0_i32_0 = arith.constant 0 : i32
    %c0_i32_1 = arith.constant 0 : i32
    return %c0_i32, %c0_i32_0 : i32, i32
  }
  func.func @transform_3(%arg0: i32) -> (i32, i32) {
    %c0_i32 = arith.constant 0 : i32
    %c0_i32_0 = arith.constant 0 : i32
    %c0_i32_1 = arith.constant 0 : i32
    return %c0_i32, %c0_i32_0 : i32, i32
  }
  func.func @transform_4(%arg0: i32) -> (i32, i32) {
    %c0_i32 = arith.constant 0 : i32
    %c0_i32_0 = arith.constant 0 : i32
    %c0_i32_1 = arith.constant 0 : i32
    return %c0_i32, %c0_i32_0 : i32, i32
  }
  func.func @transform_5(%arg0: i32) -> (i32, i32) {
    %c0_i32 = arith.constant 0 : i32
    %c0_i32_0 = arith.constant 0 : i32
    return %c0_i32, %arg0 : i32, i32
  }
}

</mosaic_0001>

<bundles_post_ra>
// kernel: edge_gcn_forward.4
= control target key start
LH: loop header
LB: loop body
LE: loop exit
PB: predicated region body
PF: predicated region fallthrough
CT: control target
= control target key end

     0   :  { %s996_s15 = smov 0   ;;  %s1221_s0 = inlined_call_operand.vmem [shape: bf16[256,256], index: 0, kind: input, shape index: {}]   ;;  %s1222_s1 = inlined_call_operand.vmem [shape: f32[256,16], index: 1, kind: input, shape index: {}]   ;;  %s1223_s2 = inlined_call_operand.vmem [shape: f32[16,16], index: 2, kind: input, shape index: {}]   ;;  %s1224_s3 = inlined_call_operand.vmem [shape: f32[1,16], index: 3, kind: input, shape index: {}]   ;;  %s1225_s4 = inlined_call_operand.vmem [shape: f32[256,16], index: 4, kind: output, shape index: {}]  }
   0x1 LB: > { %s754_s16 = sadd.s32 4294967295, %s969_s15   ;;  %p758_p0 = scmp.ge.s32.totalorder %s969_s15, 1  ;;  %s969_s15 = sphi %s996_s15, %s14_s15  }
   0x2   : > { %p164_p1 = scmp.lt.s32.totalorder %s969_s15, 3 }
   0x4   : > { %p165_p2 = pnand %p758_p0, %p164_p1 }
   0x5   : > { %s759_s11 = sshll.u32 (!%p165_p2), %s754_s16, 4 }
   0x6   : > { %168 = sbr.rel (%p165_p2) target bundleno = 557 (0x22d), region = 36  ;;  %p192_p3 = scmp.lt.s32.totalorder (!%p165_p2), %s759_s11, 31 }
   0xb   : > { %v253_v0 = vld [vmem:[%s1223_s2] sm:$0xff]  ;;  %v254_v1 = vld [vmem:[%s1223_s2 + $0x8] sm:$0xff]  ;;  %vm256_vm0 = vcmask 130048   ;;  %v207_v5 = vld [vmem:[%s1222_s1 + $0x10] sm:$0xff]  ;;  %s1227_s11 = smov (!%p192_p3, %s759_s11), 31 }
   0xc   : > { %v205_v2 = vld [vmem:[%s1222_s1] sm:$0xff]  ;;  %v255_v3 = vpack.c.bf16 %v254_v1, %v253_v0  ;;  %v206_v4 = vld [vmem:[%s1222_s1 + $0x8] sm:$0xff]  ;;  %v208_v6 = vld [vmem:[%s1222_s1 + $0x18] sm:$0xff]  ;;  %s799_s12 = sshll.u32 %s1227_s11, 3 }
   0xd   : > { %v237_v7 = vpack.c.bf16 %v206_v4, %v205_v2  ;;  %v209_v8 = vld [vmem:[%s1222_s1 + $0x20] sm:$0xff]  ;;  %v210_v9 = vld [vmem:[%s1222_s1 + $0x28] sm:$0xff]  ;;  %v238_v10 = vpack.c.bf16 %v208_v6, %v207_v5  ;;  %v211_v12 = vld [vmem:[%s1222_s1 + $0x30] sm:$0xff]  ;;  %s1132_s17 = scalar_lea.vmem %s1221_s0, %s799_s12  ;;  %s1168_s21 = scalar_lea.vmem %s1225_s4, %s799_s12 }
   0xe   : > { %881 = vmatprep.subr.bf16.mxu0 %v255_v3  ;;  %v239_v11 = vpack.c.bf16 %v210_v9, %v209_v8  ;;  %v212_v13 = vld [vmem:[%s1222_s1 + $0x38] sm:$0xff]  ;;  %v213_v14 = vld [vmem:[%s1222_s1 + $0x40] sm:$0xff]  ;;  %v214_v15 = vld [vmem:[%s1222_s1 + $0x48] sm:$0xff] }
   0xf   : > { %882 = vmatpush3.bf16.msra.mxu0 %v255_v3  ;;  %883 = vmatprep.mubr.msk.bf16.mxu0 %vm256_vm0, %v237_v7  ;;  %v240_v16 = vpack.c.bf16 %v212_v13, %v211_v12  ;;  %v241_v17 = vpack.c.bf16 %v214_v15, %v213_v14  ;;  %v215_v18 = vld [vmem:[%s1222_s1 + $0x50] sm:$0xff]  ;;  %v216_v19 = vld [vmem:[%s1222_s1 + $0x58] sm:$0xff]  ;;  %v217_v20 = vld [vmem:[%s1222_s1 + $0x60] sm:$0xff] }
  0x10   : > { %v218_v21 = vld [vmem:[%s1222_s1 + $0x68] sm:$0xff]  ;;  %v242_v22 = vpack.c.bf16 %v216_v19, %v215_v18  ;;  %v219_v24 = vld [vmem:[%s1222_s1 + $0x70] sm:$0xff]  ;;  %v220_v25 = vld [vmem:[%s1222_s1 + $0x78] sm:$0xff] }
  0x11   : > { %v243_v23 = vpack.c.bf16 %v218_v21, %v217_v20  ;;  %v221_v26 = vld [vmem:[%s1222_s1 + $0x80] sm:$0xff]  ;;  %v222_v27 = vld [vmem:[%s1222_s1 + $0x88] sm:$0xff]  ;;  %v244_v28 = vpack.c.bf16 %v220_v25, %v219_v24  ;;  %v223_v30 = vld [vmem:[%s1222_s1 + $0x90] sm:$0xff] }
  0x12   : > { %884 = vmatmul.mubr.msk.bf16.vlgmr.msra.gmra.mxu0 %vm256_vm0, %v238_v10  ;;  %v245_v29 = vpack.c.bf16 %v222_v27, %v221_v26  ;;  %v224_v31 = vld [vmem:[%s1222_s1 + $0x98] sm:$0xff]  ;;  %v225_v32 = vld [vmem:[%s1222_s1 + $0xa0] sm:$0xff]  ;;  %v226_v33 = vld [vmem:[%s1222_s1 + $0xa8] sm:$0xff] }
  0x13   : > { %887 = vmatprep.mubr.msk.bf16.mxu0 %vm256_vm0, %v239_v11  ;;  %v246_v34 = vpack.c.bf16 %v224_v31, %v223_v30  ;;  %v247_v35 = vpack.c.bf16 %v226_v33, %v225_v32  ;;  %v227_v36 = vld [vmem:[%s1222_s1 + $0xb0] sm:$0xff]  ;;  %v228_v37 = vld [vmem:[%s1222_s1 + $0xb8] sm:$0xff]  ;;  %v229_v38 = vld [vmem:[%s1222_s1 + $0xc0] sm:$0xff] }
  0x14   : > { %v230_v39 = vld [vmem:[%s1222_s1 + $0xc8] sm:$0xff]  ;;  %v248_v40 = vpack.c.bf16 %v228_v37, %v227_v36  ;;  %v231_v42 = vld [vmem:[%s1222_s1 + $0xd0] sm:$0xff]  ;;  %v232_v43 = vld [vmem:[%s1222_s1 + $0xd8] sm:$0xff] }
  0x15   : > { %v249_v41 = vpack.c.bf16 %v230_v39, %v229_v38  ;;  %v233_v44 = vld [vmem:[%s1222_s1 + $0xe0] sm:$0xff]  ;;  %v234_v45 = vld [vmem:[%s1222_s1 + $0xe8] sm:$0xff]  ;;  %v250_v46 = vpack.c.bf16 %v232_v43, %v231_v42  ;;  %v235_v48 = vld [vmem:[%s1222_s1 + $0xf0] sm:$0xff] }
  0x16   : > { %v251_v47 = vpack.c.bf16 %v234_v45, %v233_v44  ;;  %v236_v49 = vld [vmem:[%s1222_s1 + $0xf8] sm:$0xff]  ;;  %v959_v57 = vld [vmem:[%s1132_s17 + $0x4] ss:$8 sps:$4 sm:$0xff]   ;;  %v957_v38 = vld [vmem:[%s1132_s17] ss:$8 sps:$4 sm:$0xff]  }
  0x17   : > { %v252_v50 = vpack.c.bf16 %v236_v49, %v235_v48  ;;  %v941_v51 = vld [vmem:[%s1132_s17 + $0x14] ss:$8 sps:$4 sm:$0xff]   ;;  %v939_v37 = vld [vmem:[%s1132_s17 + $0x10] ss:$8 sps:$4 sm:$0xff]   ;;  %v942_v39 = vld [vmem:[%s1132_s17 + $0x24] ss:$8 sps:$4 sm:$0xff]  }
  0x18   : > { %625 = vmatprep.mubr.bf16.mxu1 %v941_v51  ;;  %v947_v42 = vld [vmem:[%s1132_s17 + $0x30] ss:$8 sps:$4 sm:$0xff]   ;;  %v948_v43 = vld [vmem:[%s1132_s17 + $0x44] ss:$8 sps:$4 sm:$0xff]   ;;  %v950_v44 = vld [vmem:[%s1132_s17 + $0x40] ss:$8 sps:$4 sm:$0xff]  }
  0x19   : > { %v951_v45 = vld [vmem:[%s1132_s17 + $0x54] ss:$8 sps:$4 sm:$0xff]   ;;  %v956_v48 = vld [vmem:[%s1132_s17 + $0x60] ss:$8 sps:$4 sm:$0xff]  }
  0x1a   : > { %888 = vmatmul.mubr.msk.bf16.gmra.mxu0 %vm256_vm0, %v240_v16  ;;  %v960_v49 = vld [vmem:[%s1132_s17 + $0x74] ss:$8 sps:$4 sm:$0xff]  }
  0x1b   : > { %891 = vmatprep.mubr.msk.bf16.mxu0 %vm256_vm0, %v241_v17 }
  0x22   : > { %892 = vmatmul.mubr.msk.bf16.gmra.mxu0 %vm256_vm0, %v242_v22 }
  0x23   : > { %895 = vmatprep.mubr.msk.bf16.mxu0 %vm256_vm0, %v243_v23 }
  0x2a   : > { %896 = vmatmul.mubr.msk.bf16.gmra.mxu0 %vm256_vm0, %v244_v28 }
  0x2b   : > { %899 = vmatprep.mubr.msk.bf16.mxu0 %vm256_vm0, %v245_v29 }
  0x32   : > { %900 = vmatmul.mubr.msk.bf16.gmra.mxu0 %vm256_vm0, %v246_v34 }
  0x33   : > { %903 = vmatprep.mubr.msk.bf16.mxu0 %vm256_vm0, %v247_v35 }
  0x3a   : > { %904 = vmatmul.mubr.msk.bf16.gmra.mxu0 %vm256_vm0, %v248_v40  ;;  %v944_v40 = vld [vmem:[%s1132_s17 + $0x20] ss:$8 sps:$4 sm:$0xff]  }
  0x3b   : > { %907 = vmatprep.mubr.msk.bf16.mxu0 %vm256_vm0, %v249_v41  ;;  %v945_v41 = vld [vmem:[%s1132_s17 + $0x34] ss:$8 sps:$4 sm:$0xff]  }
  0x42   : > { %908 = vmatmul.mubr.msk.bf16.gmra.mxu0 %vm256_vm0, %v250_v46  ;;  %v953_v46 = vld [vmem:[%s1132_s17 + $0x50] ss:$8 sps:$4 sm:$0xff]  }
  0x43   : > { %911 = vmatprep.mubr.msk.bf16.mxu0 %vm256_vm0, %v251_v47  ;;  %v954_v47 = vld [vmem:[%s1132_s17 + $0x64] ss:$8 sps:$4 sm:$0xff]  }
  0x4a   : > { %912 = vmatmul.mubr.msk.bf16.gmra.mxu0 %vm256_vm0, %v252_v50  ;;  %v962_v50 = vld [vmem:[%s1132_s17 + $0x70] ss:$8 sps:$4 sm:$0xff]  }
  0x4b   : > { %617 = vmatprep.mubr.bf16.mxu0 %v959_v57 }
  0xd2   : > { %v885_v52 = vpop.f32.mrf.mxu0 }
  0xd4   : > { %v339_v53 = vpop.f32.mrf.mxu0 }
  0xd6   : > { %v886_v54 = vpop.f32.mrf.mxu0 }
  0xd7   : > { %v1135_v55 = vpack.c.bf16 %v886_v54, %v885_v52 }
  0xd8   : > { %v342_v56 = vpop.f32.mrf.mxu0 }
  0xd9   : > { %v1138_v58 = vpack.c.bf16 %v342_v56, %v339_v53  ;;  %v1161_v53 = vld [vmem:[%s1224_s3] ss:$0 sm:$0xff] }
  0xda   : > { %v889_v59 = vpop.f32.mrf.mxu0 }
  0xdc   : > { %v355_v60 = vpop.f32.mrf.mxu0 }
  0xde   : > { %v890_v61 = vpop.f32.mrf.mxu0 }
  0xdf   : > { %v485_v62 = vpack.c.bf16 %v890_v61, %v889_v59 }
  0xe0   : > { %v358_v63 = vpop.f32.mrf.mxu0 }
  0xe1   : > { %v484_v0 = vpack.c.bf16 %v358_v63, %v355_v60 }
  0xe2   : > { %v893_v1 = vpop.f32.mrf.mxu0 }
  0xe4   : > { %v371_v2 = vpop.f32.mrf.mxu0 }
  0xe6   : > { %v894_v3 = vpop.f32.mrf.mxu0 }
  0xe7   : > { %v487_v30 = vpack.c.bf16 %v894_v3, %v893_v1 }
  0xe8   : > { %v374_v4 = vpop.f32.mrf.mxu0 }
  0xe9   : > { %v486_v32 = vpack.c.bf16 %v374_v4, %v371_v2 }
  0xea   : > { %v897_v5 = vpop.f32.mrf.mxu0 }
  0xec   : > { %v387_v6 = vpop.f32.mrf.mxu0 }
  0xee   : > { %v898_v7 = vpop.f32.mrf.mxu0 }
  0xef   : > { %v489_v25 = vpack.c.bf16 %v898_v7, %v897_v5 }
  0xf0   : > { %v390_v8 = vpop.f32.mrf.mxu0 }
  0xf1   : > { %v488_v28 = vpack.c.bf16 %v390_v8, %v387_v6 }
  0xf2   : > { %v901_v9 = vpop.f32.mrf.mxu0 }
  0xf4   : > { %v403_v10 = vpop.f32.mrf.mxu0 }
  0xf6   : > { %v902_v11 = vpop.f32.mrf.mxu0 }
  0xf7   : > { %v491_v35 = vpack.c.bf16 %v902_v11, %v901_v9 }
  0xf8   : > { %v406_v12 = vpop.f32.mrf.mxu0 }
  0xf9   : > { %v490_v36 = vpack.c.bf16 %v406_v12, %v403_v10 }
  0xfa   : > { %v905_v13 = vpop.f32.mrf.mxu0 }
  0xfc   : > { %v419_v14 = vpop.f32.mrf.mxu0 }
  0xfe   : > { %v906_v15 = vpop.f32.mrf.mxu0 }
  0xff   : > { %v493_v33 = vpack.c.bf16 %v906_v15, %v905_v13 }
 0x100   : > { %v422_v16 = vpop.f32.mrf.mxu0 }
 0x101   : > { %v492_v34 = vpack.c.bf16 %v422_v16, %v419_v14 }
 0x102   : > { %v909_v17 = vpop.f32.mrf.mxu0 }
 0x104   : > { %v435_v18 = vpop.f32.mrf.mxu0 }
 0x106   : > { %v910_v19 = vpop.f32.mrf.mxu0 }
 0x107   : > { %v495_v29 = vpack.c.bf16 %v910_v19, %v909_v17 }
 0x108   : > { %v438_v20 = vpop.f32.mrf.mxu0 }
 0x109   : > { %v494_v31 = vpack.c.bf16 %v438_v20, %v435_v18 }
 0x10a   : > { %v913_v21 = vpop.f32.mrf.mxu0 }
 0x10c   : > { %v451_v22 = vpop.f32.mrf.mxu0 }
 0x10e   : > { %v914_v23 = vpop.f32.mrf.mxu0 }
 0x10f   : > { %v497_v24 = vpack.c.bf16 %v914_v23, %v913_v21 }
 0x110   : > { %v454_v26 = vpop.f32.mrf.mxu0 }
 0x111   : > { %v496_v27 = vpack.c.bf16 %v454_v26, %v451_v22  ;;  %817 = vmatprep.subr.bf16.mxu0 %v497_v24  ;;  %915 = vmatprep.subr.bf16.mxu1 %v497_v24 }
 0x112   : > { %818 = vmatpush3.bf16.msra.mxu0 %v489_v25  ;;  %923 = vmatpush3.bf16.msra.mxu1 %v489_v25 }
 0x113   : > { %819 = vmatprep.subr.bf16.mxu0 %v496_v27  ;;  %916 = vmatprep.subr.bf16.mxu1 %v496_v27 }
 0x116   : > { %820 = vmatpush3.bf16.msra.mxu0 %v488_v28  ;;  %924 = vmatpush3.bf16.msra.mxu1 %v488_v28 }
 0x117   : > { %821 = vmatprep.subr.bf16.mxu0 %v495_v29  ;;  %917 = vmatprep.subr.bf16.mxu1 %v495_v29 }
 0x11a   : > { %822 = vmatpush3.bf16.msra.mxu0 %v487_v30  ;;  %925 = vmatpush3.bf16.msra.mxu1 %v487_v30 }
 0x11b   : > { %823 = vmatprep.subr.bf16.mxu0 %v494_v31  ;;  %918 = vmatprep.subr.bf16.mxu1 %v494_v31 }
 0x11e   : > { %824 = vmatpush3.bf16.msra.mxu0 %v486_v32  ;;  %926 = vmatpush3.bf16.msra.mxu1 %v486_v32 }
 0x11f   : > { %825 = vmatprep.subr.bf16.mxu0 %v493_v33  ;;  %919 = vmatprep.subr.bf16.mxu1 %v493_v33 }
 0x122   : > { %826 = vmatpush3.bf16.msra.mxu0 %v485_v62  ;;  %927 = vmatpush3.bf16.msra.mxu1 %v485_v62 }
 0x123   : > { %827 = vmatprep.subr.bf16.mxu0 %v492_v34  ;;  %920 = vmatprep.subr.bf16.mxu1 %v492_v34 }
 0x126   : > { %828 = vmatpush3.bf16.msra.mxu0 %v484_v0  ;;  %928 = vmatpush3.bf16.msra.mxu1 %v484_v0 }
 0x127   : > { %829 = vmatprep.subr.bf16.mxu0 %v491_v35  ;;  %921 = vmatprep.subr.bf16.mxu1 %v491_v35 }
 0x12a   : > { %830 = vmatpush3.bf16.msra.mxu0 %v1135_v55  ;;  %929 = vmatpush3.bf16.msra.mxu1 %v1135_v55 }
 0x12b   : > { %831 = vmatprep.subr.bf16.mxu0 %v490_v36  ;;  %922 = vmatprep.subr.bf16.mxu1 %v490_v36 }
 0x12e   : > { %832 = vmatpush3.bf16.msra.mxu0 %v1138_v58  ;;  %930 = vmatpush3.bf16.msra.mxu1 %v1138_v58 }
 0x131   : > { %626 = vmatmul.mubr.bf16.vlgmr.msra.gmra.mxu1 %v939_v37  ;;  %618 = vmatmul.mubr.bf16.vlgmr.msra.gmra.mxu0 %v957_v38 }
 0x132   : > { %633 = vmatprep.mubr.bf16.mxu1 %v942_v39 }
 0x139   : > { %634 = vmatmul.mubr.bf16.gmra.mxu1 %v944_v40 }
 0x13a   : > { %641 = vmatprep.mubr.bf16.mxu1 %v945_v41 }
 0x141   : > { %642 = vmatmul.mubr.bf16.gmra.mxu1 %v947_v42 }
 0x142   : > { %649 = vmatprep.mubr.bf16.mxu1 %v948_v43 }
 0x149   : > { %650 = vmatmul.mubr.bf16.gmra.mxu1 %v950_v44 }
 0x14a   : > { %657 = vmatprep.mubr.bf16.mxu1 %v951_v45 }
 0x151   : > { %658 = vmatmul.mubr.bf16.gmra.mxu1 %v953_v46 }
 0x152   : > { %665 = vmatprep.mubr.bf16.mxu1 %v954_v47 }
 0x159   : > { %666 = vmatmul.mubr.bf16.gmra.mxu1 %v956_v48 }
 0x15a   : > { %673 = vmatprep.mubr.bf16.mxu1 %v960_v49 }
 0x161   : > { %674 = vmatmul.mubr.bf16.gmra.mxu1 %v962_v50 }
 0x1f1   : > { %v839_v51 = vpop.f32.mrf.mxu1  ;;  %v833_v52 = vpop.f32.mrf.mxu0 }
 0x1f3   : > { %v840_v54 = vpop.f32.mrf.mxu1  ;;  %v834_v55 = vpop.f32.mrf.mxu0 }
 0x1f4   : > { %v841_v56 = vadd.f32 %v840_v54, %v839_v51  ;;  %v835_v57 = vadd.f32 %v834_v55, %v833_v52 }
 0x1f5   : > { %v842_v58 = vpop.f32.mrf.mxu1  ;;  %v836_v59 = vpop.f32.mrf.mxu0 }
 0x1f6   : > { %v628_v60 = vadd.f32 %v841_v56, %v1161_v53  ;;  %v620_v61 = vadd.f32 %v835_v57, %v1161_v53 }
 0x1f7   : > { %v843_v62 = vpop.f32.mrf.mxu1  ;;  %v837_v63 = vpop.f32.mrf.mxu0 }
 0x1f8   : > { %684 = vst.msk [vmem:[%s1168_s21 + $0x10] sm:$0xff] %vm256_vm0, %v628_v60  ;;  %v844_v0 = vadd.f32 %v843_v62, %v842_v58  ;;  %682 = vst.msk [vmem:[%s1168_s21] sm:$0xff] %vm256_vm0, %v620_v61  ;;  %v838_v1 = vadd.f32 %v837_v63, %v836_v59 }
 0x1f9   : > { %v845_v2 = vpop.f32.mrf.mxu1 }
 0x1fa   : > { %v631_v3 = vadd.f32 %v844_v0, %v1161_v53  ;;  %v623_v4 = vadd.f32 %v838_v1, %v1161_v53 }
 0x1fb   : > { %v846_v5 = vpop.f32.mrf.mxu1 }
 0x1fc   : > { %685 = vst.msk [vmem:[%s1168_s21 + $0x18] sm:$0xff] %vm256_vm0, %v631_v3  ;;  %v847_v6 = vadd.f32 %v846_v5, %v845_v2  ;;  %683 = vst.msk [vmem:[%s1168_s21 + $0x8] sm:$0xff] %vm256_vm0, %v623_v4 }
 0x1fd   : > { %v848_v7 = vpop.f32.mrf.mxu1 }
 0x1fe   : > { %v636_v8 = vadd.f32 %v847_v6, %v1161_v53 }
 0x1ff   : > { %v849_v9 = vpop.f32.mrf.mxu1 }
 0x200   : > { %686 = vst.msk [vmem:[%s1168_s21 + $0x20] sm:$0xff] %vm256_vm0, %v636_v8  ;;  %v850_v10 = vadd.f32 %v849_v9, %v848_v7 }
 0x201   : > { %v851_v11 = vpop.f32.mrf.mxu1 }
 0x202   : > { %v639_v12 = vadd.f32 %v850_v10, %v1161_v53 }
 0x203   : > { %v852_v13 = vpop.f32.mrf.mxu1 }
 0x204   : > { %687 = vst.msk [vmem:[%s1168_s21 + $0x28] sm:$0xff] %vm256_vm0, %v639_v12  ;;  %v853_v14 = vadd.f32 %v852_v13, %v851_v11 }
 0x205   : > { %v854_v15 = vpop.f32.mrf.mxu1 }
 0x206   : > { %v644_v16 = vadd.f32 %v853_v14, %v1161_v53 }
 0x207   : > { %v855_v17 = vpop.f32.mrf.mxu1 }
 0x208   : > { %688 = vst.msk [vmem:[%s1168_s21 + $0x30] sm:$0xff] %vm256_vm0, %v644_v16  ;;  %v856_v18 = vadd.f32 %v855_v17, %v854_v15 }
 0x209   : > { %v857_v19 = vpop.f32.mrf.mxu1 }
 0x20a   : > { %v647_v20 = vadd.f32 %v856_v18, %v1161_v53 }
 0x20b   : > { %v858_v21 = vpop.f32.mrf.mxu1 }
 0x20c   : > { %689 = vst.msk [vmem:[%s1168_s21 + $0x38] sm:$0xff] %vm256_vm0, %v647_v20  ;;  %v859_v22 = vadd.f32 %v858_v21, %v857_v19 }
 0x20d   : > { %v860_v23 = vpop.f32.mrf.mxu1 }
 0x20e   : > { %v652_v24 = vadd.f32 %v859_v22, %v1161_v53 }
 0x20f   : > { %v861_v25 = vpop.f32.mrf.mxu1 }
 0x210   : > { %690 = vst.msk [vmem:[%s1168_s21 + $0x40] sm:$0xff] %vm256_vm0, %v652_v24  ;;  %v862_v26 = vadd.f32 %v861_v25, %v860_v23 }
 0x211   : > { %v863_v27 = vpop.f32.mrf.mxu1 }
 0x212   : > { %v655_v28 = vadd.f32 %v862_v26, %v1161_v53 }
 0x213   : > { %v864_v29 = vpop.f32.mrf.mxu1 }
 0x214   : > { %691 = vst.msk [vmem:[%s1168_s21 + $0x48] sm:$0xff] %vm256_vm0, %v655_v28  ;;  %v865_v30 = vadd.f32 %v864_v29, %v863_v27 }
 0x215   : > { %v866_v31 = vpop.f32.mrf.mxu1 }
 0x216   : > { %v660_v32 = vadd.f32 %v865_v30, %v1161_v53 }
 0x217   : > { %v867_v33 = vpop.f32.mrf.mxu1 }
 0x218   : > { %692 = vst.msk [vmem:[%s1168_s21 + $0x50] sm:$0xff] %vm256_vm0, %v660_v32  ;;  %v868_v34 = vadd.f32 %v867_v33, %v866_v31 }
 0x219   : > { %v869_v35 = vpop.f32.mrf.mxu1 }
 0x21a   : > { %v663_v36 = vadd.f32 %v868_v34, %v1161_v53 }
 0x21b   : > { %v870_v37 = vpop.f32.mrf.mxu1 }
 0x21c   : > { %693 = vst.msk [vmem:[%s1168_s21 + $0x58] sm:$0xff] %vm256_vm0, %v663_v36  ;;  %v871_v38 = vadd.f32 %v870_v37, %v869_v35 }
 0x21d   : > { %v872_v39 = vpop.f32.mrf.mxu1 }
 0x21e   : > { %v668_v40 = vadd.f32 %v871_v38, %v1161_v53 }
 0x21f   : > { %v873_v41 = vpop.f32.mrf.mxu1 }
 0x220   : > { %694 = vst.msk [vmem:[%s1168_s21 + $0x60] sm:$0xff] %vm256_vm0, %v668_v40  ;;  %v874_v42 = vadd.f32 %v873_v41, %v872_v39 }
 0x221   : > { %v875_v43 = vpop.f32.mrf.mxu1 }
 0x222   : > { %v671_v44 = vadd.f32 %v874_v42, %v1161_v53 }
 0x223   : > { %v876_v45 = vpop.f32.mrf.mxu1 }
 0x224   : > { %695 = vst.msk [vmem:[%s1168_s21 + $0x68] sm:$0xff] %vm256_vm0, %v671_v44  ;;  %v877_v46 = vadd.f32 %v876_v45, %v875_v43 }
 0x225   : > { %v878_v47 = vpop.f32.mrf.mxu1 }
 0x226   : > { %v676_v48 = vadd.f32 %v877_v46, %v1161_v53 }
 0x227   : > { %v879_v49 = vpop.f32.mrf.mxu1 }
 0x228   : > { %696 = vst.msk [vmem:[%s1168_s21 + $0x70] sm:$0xff] %vm256_vm0, %v676_v48  ;;  %v880_v50 = vadd.f32 %v879_v49, %v878_v47 }
 0x22a   : > { %v679_v51 = vadd.f32 %v880_v50, %v1161_v53 }
 0x22c   : > { %697 = vst.msk [vmem:[%s1168_s21 + $0x78] sm:$0xff] %vm256_vm0, %v679_v51 }
 0x22d PF: > { %s14_s15 = sadd.s32 1, %s969_s15  }
 0x22e   : > { %p11_p4 = scmp.ge.s32.totalorder %s14_s15, 4  }
 0x230   :  { %13 = sbr.rel (!%p11_p4) target bundleno = 1 (0x1), region = 66 }

// kernel: edge_gcn_forward.3
= control target key start
LH: loop header
LB: loop body
LE: loop exit
PB: predicated region body
PF: predicated region fallthrough
CT: control target
= control target key end

     0   :  { %s1017_s15 = smov 0   ;;  %s1239_s0 = inlined_call_operand.vmem [shape: bf16[256,256], index: 0, kind: input, shape index: {}]   ;;  %s1240_s1 = inlined_call_operand.vmem [shape: f32[256,4], index: 1, kind: input, shape index: {}]   ;;  %s1241_s2 = inlined_call_operand.vmem [shape: f32[4,16], index: 2, kind: input, shape index: {}]   ;;  %s1242_s3 = inlined_call_operand.vmem [shape: f32[1,16], index: 3, kind: input, shape index: {}]   ;;  %s1243_s4 = inlined_call_operand.vmem [shape: f32[256,16], index: 4, kind: output, shape index: {}]  }
   0x1 LB: > { %s774_s16 = sadd.s32 4294967295, %s990_s15   ;;  %p778_p0 = scmp.ge.s32.totalorder %s990_s15, 1  ;;  %s990_s15 = sphi %s1017_s15, %s14_s15  }
   0x2   : > { %p164_p1 = scmp.lt.s32.totalorder %s990_s15, 3 }
   0x4   : > { %p165_p2 = pnand %p778_p0, %p164_p1 }
   0x5   : > { %s779_s9 = sshll.u32 (!%p165_p2), %s774_s16, 4 }
   0x6   : > { %168 = sbr.rel (%p165_p2) target bundleno = 559 (0x22f), region = 36  ;;  %p192_p3 = scmp.lt.s32.totalorder (!%p165_p2), %s779_s9, 31 }
   0xb   : > { %v253_v0 = vld [vmem:[%s1241_s2] sm:$0xf]  ;;  %vm304_vm0 = vcmask 1041408   ;;  %v206_v2 = vld [vmem:[%s1240_s1 + $0x8] sm:$0xff]  ;;  %vm255_vm1 = vcmask 31744   ;;  %v207_v5 = vld [vmem:[%s1240_s1 + $0x10] sm:$0xff] }
   0xc   : > { %v205_v1 = vld [vmem:[%s1240_s1] sm:$0xff]  ;;  %v254_v3 = vpack.c.bf16 %v253_v0, %v253_v0  ;;  %v208_v6 = vld [vmem:[%s1240_s1 + $0x18] sm:$0xff]  ;;  %v210_v8 = vld [vmem:[%s1240_s1 + $0x28] sm:$0xff]  ;;  %s1245_s9 = smov (!%p192_p3, %s779_s9), 31  ;;  %vm701_vm2 = vcmask 130048  }
   0xd   : > { %v237_v4 = vpack.c.bf16 %v206_v2, %v205_v1  ;;  %v209_v7 = vld [vmem:[%s1240_s1 + $0x20] sm:$0xff]  ;;  %v238_v10 = vpack.c.bf16 %v208_v6, %v207_v5  ;;  %v211_v12 = vld [vmem:[%s1240_s1 + $0x30] sm:$0xff]  ;;  %v212_v13 = vld [vmem:[%s1240_s1 + $0x38] sm:$0xff]  ;;  %s819_s10 = sshll.u32 %s1245_s9, 3 }
   0xe   : > { %951 = vmatprep.subr.msk.bf16.mxu0 %vm304_vm0, %v254_v3  ;;  %v306_v9 = vsel %vm304_vm0, %v254_v3, 0  ;;  %v239_v11 = vpack.c.bf16 %v210_v8, %v209_v7  ;;  %v213_v14 = vld [vmem:[%s1240_s1 + $0x40] sm:$0xff]  ;;  %v214_v15 = vld [vmem:[%s1240_s1 + $0x48] sm:$0xff]  ;;  %v240_v16 = vpack.c.bf16 %v212_v13, %v211_v12  ;;  %v215_v18 = vld [vmem:[%s1240_s1 + $0x50] sm:$0xff]  ;;  %s1150_s13 = scalar_lea.vmem %s1239_s0, %s819_s10  ;;  %s1188_s19 = scalar_lea.vmem %s1243_s4, %s819_s10 }
   0xf   : > { %903 = vmatprep.mubr.msk.bf16.mxu0 %vm255_vm1, %v237_v4  ;;  %902 = vmatpush3.bf16.msra.mxu0 %v306_v9  ;;  %v241_v17 = vpack.c.bf16 %v214_v15, %v213_v14  ;;  %v216_v19 = vld [vmem:[%s1240_s1 + $0x58] sm:$0xff]  ;;  %v217_v20 = vld [vmem:[%s1240_s1 + $0x60] sm:$0xff]  ;;  %v218_v21 = vld [vmem:[%s1240_s1 + $0x68] sm:$0xff] }
  0x10   : > { %v242_v22 = vpack.c.bf16 %v216_v19, %v215_v18  ;;  %v243_v23 = vpack.c.bf16 %v218_v21, %v217_v20  ;;  %v219_v24 = vld [vmem:[%s1240_s1 + $0x70] sm:$0xff]  ;;  %v220_v25 = vld [vmem:[%s1240_s1 + $0x78] sm:$0xff]  ;;  %v221_v26 = vld [vmem:[%s1240_s1 + $0x80] sm:$0xff] }
  0x11   : > { %v222_v27 = vld [vmem:[%s1240_s1 + $0x88] sm:$0xff]  ;;  %v244_v28 = vpack.c.bf16 %v220_v25, %v219_v24  ;;  %v223_v30 = vld [vmem:[%s1240_s1 + $0x90] sm:$0xff]  ;;  %v224_v31 = vld [vmem:[%s1240_s1 + $0x98] sm:$0xff] }
  0x12   : > { %904 = vmatmul.mubr.msk.bf16.vlgmr.msra.gmra.mxu0 %vm255_vm1, %v238_v10  ;;  %v245_v29 = vpack.c.bf16 %v222_v27, %v221_v26  ;;  %v225_v32 = vld [vmem:[%s1240_s1 + $0xa0] sm:$0xff]  ;;  %v226_v33 = vld [vmem:[%s1240_s1 + $0xa8] sm:$0xff]  ;;  %v246_v34 = vpack.c.bf16 %v224_v31, %v223_v30  ;;  %v227_v36 = vld [vmem:[%s1240_s1 + $0xb0] sm:$0xff] }
  0x13   : > { %907 = vmatprep.mubr.msk.bf16.mxu0 %vm255_vm1, %v239_v11  ;;  %v247_v35 = vpack.c.bf16 %v226_v33, %v225_v32  ;;  %v228_v37 = vld [vmem:[%s1240_s1 + $0xb8] sm:$0xff]  ;;  %v229_v38 = vld [vmem:[%s1240_s1 + $0xc0] sm:$0xff]  ;;  %v230_v39 = vld [vmem:[%s1240_s1 + $0xc8] sm:$0xff] }
  0x14   : > { %v248_v40 = vpack.c.bf16 %v228_v37, %v227_v36  ;;  %v249_v41 = vpack.c.bf16 %v230_v39, %v229_v38  ;;  %v231_v42 = vld [vmem:[%s1240_s1 + $0xd0] sm:$0xff]  ;;  %v232_v43 = vld [vmem:[%s1240_s1 + $0xd8] sm:$0xff]  ;;  %v233_v44 = vld [vmem:[%s1240_s1 + $0xe0] sm:$0xff] }
  0x15   : > { %v234_v45 = vld [vmem:[%s1240_s1 + $0xe8] sm:$0xff]  ;;  %v250_v46 = vpack.c.bf16 %v232_v43, %v231_v42  ;;  %v235_v48 = vld [vmem:[%s1240_s1 + $0xf0] sm:$0xff]  ;;  %v236_v49 = vld [vmem:[%s1240_s1 + $0xf8] sm:$0xff] }
  0x16   : > { %v251_v47 = vpack.c.bf16 %v234_v45, %v233_v44  ;;  %v252_v50 = vpack.c.bf16 %v236_v49, %v235_v48  ;;  %v962_v51 = vld [vmem:[%s1150_s13 + $0x14] ss:$8 sps:$4 sm:$0xff]   ;;  %v980_v57 = vld [vmem:[%s1150_s13 + $0x4] ss:$8 sps:$4 sm:$0xff]   ;;  %v960_v37 = vld [vmem:[%s1150_s13 + $0x10] ss:$8 sps:$4 sm:$0xff]  }
  0x17   : > { %628 = vmatprep.mubr.bf16.mxu1 %v962_v51  ;;  %v978_v38 = vld [vmem:[%s1150_s13] ss:$8 sps:$4 sm:$0xff]   ;;  %v963_v39 = vld [vmem:[%s1150_s13 + $0x24] ss:$8 sps:$4 sm:$0xff]   ;;  %v968_v42 = vld [vmem:[%s1150_s13 + $0x30] ss:$8 sps:$4 sm:$0xff]  }
  0x18   : > { %v969_v43 = vld [vmem:[%s1150_s13 + $0x44] ss:$8 sps:$4 sm:$0xff]   ;;  %v971_v44 = vld [vmem:[%s1150_s13 + $0x40] ss:$8 sps:$4 sm:$0xff]   ;;  %v972_v45 = vld [vmem:[%s1150_s13 + $0x54] ss:$8 sps:$4 sm:$0xff]  }
  0x19   : > { %v977_v48 = vld [vmem:[%s1150_s13 + $0x60] ss:$8 sps:$4 sm:$0xff]   ;;  %v981_v49 = vld [vmem:[%s1150_s13 + $0x74] ss:$8 sps:$4 sm:$0xff]  }
  0x1a   : > { %908 = vmatmul.mubr.msk.bf16.gmra.mxu0 %vm255_vm1, %v240_v16 }
  0x1b   : > { %911 = vmatprep.mubr.msk.bf16.mxu0 %vm255_vm1, %v241_v17 }
  0x22   : > { %912 = vmatmul.mubr.msk.bf16.gmra.mxu0 %vm255_vm1, %v242_v22 }
  0x23   : > { %915 = vmatprep.mubr.msk.bf16.mxu0 %vm255_vm1, %v243_v23 }
  0x2a   : > { %916 = vmatmul.mubr.msk.bf16.gmra.mxu0 %vm255_vm1, %v244_v28 }
  0x2b   : > { %919 = vmatprep.mubr.msk.bf16.mxu0 %vm255_vm1, %v245_v29 }
  0x32   : > { %920 = vmatmul.mubr.msk.bf16.gmra.mxu0 %vm255_vm1, %v246_v34 }
  0x33   : > { %923 = vmatprep.mubr.msk.bf16.mxu0 %vm255_vm1, %v247_v35 }
  0x3a   : > { %924 = vmatmul.mubr.msk.bf16.gmra.mxu0 %vm255_vm1, %v248_v40  ;;  %v965_v40 = vld [vmem:[%s1150_s13 + $0x20] ss:$8 sps:$4 sm:$0xff]  }
  0x3b   : > { %927 = vmatprep.mubr.msk.bf16.mxu0 %vm255_vm1, %v249_v41  ;;  %v966_v41 = vld [vmem:[%s1150_s13 + $0x34] ss:$8 sps:$4 sm:$0xff]  }
  0x42   : > { %928 = vmatmul.mubr.msk.bf16.gmra.mxu0 %vm255_vm1, %v250_v46  ;;  %v974_v46 = vld [vmem:[%s1150_s13 + $0x50] ss:$8 sps:$4 sm:$0xff]  }
  0x43   : > { %931 = vmatprep.mubr.msk.bf16.mxu0 %vm255_vm1, %v251_v47  ;;  %v975_v47 = vld [vmem:[%s1150_s13 + $0x64] ss:$8 sps:$4 sm:$0xff]  }
  0x4a   : > { %932 = vmatmul.mubr.msk.bf16.gmra.mxu0 %vm255_vm1, %v252_v50  ;;  %v983_v50 = vld [vmem:[%s1150_s13 + $0x70] ss:$8 sps:$4 sm:$0xff]  }
  0x4b   : > { %620 = vmatprep.mubr.bf16.mxu0 %v980_v57 }
  0xd2   : > { %v905_v52 = vpop.f32.mrf.mxu0 }
  0xd4   : > { %v342_v53 = vpop.f32.mrf.mxu0 }
  0xd6   : > { %v906_v54 = vpop.f32.mrf.mxu0 }
  0xd7   : > { %v1153_v55 = vpack.c.bf16 %v906_v54, %v905_v52 }
  0xd8   : > { %v345_v56 = vpop.f32.mrf.mxu0 }
  0xd9   : > { %v1156_v58 = vpack.c.bf16 %v345_v56, %v342_v53  ;;  %v1179_v53 = vld [vmem:[%s1242_s3] ss:$0 sm:$0xff] }
  0xda   : > { %v909_v59 = vpop.f32.mrf.mxu0 }
  0xdc   : > { %v358_v60 = vpop.f32.mrf.mxu0 }
  0xde   : > { %v910_v61 = vpop.f32.mrf.mxu0 }
  0xdf   : > { %v488_v62 = vpack.c.bf16 %v910_v61, %v909_v59 }
  0xe0   : > { %v361_v63 = vpop.f32.mrf.mxu0 }
  0xe1   : > { %v487_v0 = vpack.c.bf16 %v361_v63, %v358_v60 }
  0xe2   : > { %v913_v1 = vpop.f32.mrf.mxu0 }
  0xe4   : > { %v374_v2 = vpop.f32.mrf.mxu0 }
  0xe6   : > { %v914_v3 = vpop.f32.mrf.mxu0 }
  0xe7   : > { %v490_v30 = vpack.c.bf16 %v914_v3, %v913_v1 }
  0xe8   : > { %v377_v4 = vpop.f32.mrf.mxu0 }
  0xe9   : > { %v489_v32 = vpack.c.bf16 %v377_v4, %v374_v2 }
  0xea   : > { %v917_v5 = vpop.f32.mrf.mxu0 }
  0xec   : > { %v390_v6 = vpop.f32.mrf.mxu0 }
  0xee   : > { %v918_v7 = vpop.f32.mrf.mxu0 }
  0xef   : > { %v492_v25 = vpack.c.bf16 %v918_v7, %v917_v5 }
  0xf0   : > { %v393_v8 = vpop.f32.mrf.mxu0 }
  0xf1   : > { %v491_v28 = vpack.c.bf16 %v393_v8, %v390_v6 }
  0xf2   : > { %v921_v9 = vpop.f32.mrf.mxu0 }
  0xf4   : > { %v406_v10 = vpop.f32.mrf.mxu0 }
  0xf6   : > { %v922_v11 = vpop.f32.mrf.mxu0 }
  0xf7   : > { %v494_v35 = vpack.c.bf16 %v922_v11, %v921_v9 }
  0xf8   : > { %v409_v12 = vpop.f32.mrf.mxu0 }
  0xf9   : > { %v493_v36 = vpack.c.bf16 %v409_v12, %v406_v10 }
  0xfa   : > { %v925_v13 = vpop.f32.mrf.mxu0 }
  0xfc   : > { %v422_v14 = vpop.f32.mrf.mxu0 }
  0xfe   : > { %v926_v15 = vpop.f32.mrf.mxu0 }
  0xff   : > { %v496_v33 = vpack.c.bf16 %v926_v15, %v925_v13 }
 0x100   : > { %v425_v16 = vpop.f32.mrf.mxu0 }
 0x101   : > { %v495_v34 = vpack.c.bf16 %v425_v16, %v422_v14 }
 0x102   : > { %v929_v17 = vpop.f32.mrf.mxu0 }
 0x104   : > { %v438_v18 = vpop.f32.mrf.mxu0 }
 0x106   : > { %v930_v19 = vpop.f32.mrf.mxu0 }
 0x107   : > { %v498_v29 = vpack.c.bf16 %v930_v19, %v929_v17 }
 0x108   : > { %v441_v20 = vpop.f32.mrf.mxu0 }
 0x109   : > { %v497_v31 = vpack.c.bf16 %v441_v20, %v438_v18 }
 0x10a   : > { %v933_v21 = vpop.f32.mrf.mxu0 }
 0x10c   : > { %v454_v22 = vpop.f32.mrf.mxu0 }
 0x10e   : > { %v934_v23 = vpop.f32.mrf.mxu0 }
 0x10f   : > { %v500_v24 = vpack.c.bf16 %v934_v23, %v933_v21 }
 0x110   : > { %v457_v26 = vpop.f32.mrf.mxu0 }
 0x111   : > { %v499_v27 = vpack.c.bf16 %v457_v26, %v454_v22  ;;  %837 = vmatprep.subr.bf16.mxu0 %v500_v24  ;;  %935 = vmatprep.subr.bf16.mxu1 %v500_v24 }
 0x112   : > { %838 = vmatpush3.bf16.msra.mxu0 %v492_v25  ;;  %943 = vmatpush3.bf16.msra.mxu1 %v492_v25 }
 0x113   : > { %839 = vmatprep.subr.bf16.mxu0 %v499_v27  ;;  %936 = vmatprep.subr.bf16.mxu1 %v499_v27 }
 0x116   : > { %840 = vmatpush3.bf16.msra.mxu0 %v491_v28  ;;  %944 = vmatpush3.bf16.msra.mxu1 %v491_v28 }
 0x117   : > { %841 = vmatprep.subr.bf16.mxu0 %v498_v29  ;;  %937 = vmatprep.subr.bf16.mxu1 %v498_v29 }
 0x11a   : > { %842 = vmatpush3.bf16.msra.mxu0 %v490_v30  ;;  %945 = vmatpush3.bf16.msra.mxu1 %v490_v30 }
 0x11b   : > { %843 = vmatprep.subr.bf16.mxu0 %v497_v31  ;;  %938 = vmatprep.subr.bf16.mxu1 %v497_v31 }
 0x11e   : > { %844 = vmatpush3.bf16.msra.mxu0 %v489_v32  ;;  %946 = vmatpush3.bf16.msra.mxu1 %v489_v32 }
 0x11f   : > { %845 = vmatprep.subr.bf16.mxu0 %v496_v33  ;;  %939 = vmatprep.subr.bf16.mxu1 %v496_v33 }
 0x122   : > { %846 = vmatpush3.bf16.msra.mxu0 %v488_v62  ;;  %947 = vmatpush3.bf16.msra.mxu1 %v488_v62 }
 0x123   : > { %847 = vmatprep.subr.bf16.mxu0 %v495_v34  ;;  %940 = vmatprep.subr.bf16.mxu1 %v495_v34 }
 0x126   : > { %848 = vmatpush3.bf16.msra.mxu0 %v487_v0  ;;  %948 = vmatpush3.bf16.msra.mxu1 %v487_v0 }
 0x127   : > { %849 = vmatprep.subr.bf16.mxu0 %v494_v35  ;;  %941 = vmatprep.subr.bf16.mxu1 %v494_v35 }
 0x12a   : > { %850 = vmatpush3.bf16.msra.mxu0 %v1153_v55  ;;  %949 = vmatpush3.bf16.msra.mxu1 %v1153_v55 }
 0x12b   : > { %851 = vmatprep.subr.bf16.mxu0 %v493_v36  ;;  %942 = vmatprep.subr.bf16.mxu1 %v493_v36 }
 0x12e   : > { %852 = vmatpush3.bf16.msra.mxu0 %v1156_v58  ;;  %950 = vmatpush3.bf16.msra.mxu1 %v1156_v58 }
 0x131   : > { %629 = vmatmul.mubr.bf16.vlgmr.msra.gmra.mxu1 %v960_v37  ;;  %621 = vmatmul.mubr.bf16.vlgmr.msra.gmra.mxu0 %v978_v38 }
 0x132   : > { %636 = vmatprep.mubr.bf16.mxu1 %v963_v39 }
 0x139   : > { %637 = vmatmul.mubr.bf16.gmra.mxu1 %v965_v40 }
 0x13a   : > { %644 = vmatprep.mubr.bf16.mxu1 %v966_v41 }
 0x141   : > { %645 = vmatmul.mubr.bf16.gmra.mxu1 %v968_v42 }
 0x142   : > { %652 = vmatprep.mubr.bf16.mxu1 %v969_v43 }
 0x149   : > { %653 = vmatmul.mubr.bf16.gmra.mxu1 %v971_v44 }
 0x14a   : > { %660 = vmatprep.mubr.bf16.mxu1 %v972_v45 }
 0x151   : > { %661 = vmatmul.mubr.bf16.gmra.mxu1 %v974_v46 }
 0x152   : > { %668 = vmatprep.mubr.bf16.mxu1 %v975_v47 }
 0x159   : > { %669 = vmatmul.mubr.bf16.gmra.mxu1 %v977_v48 }
 0x15a   : > { %676 = vmatprep.mubr.bf16.mxu1 %v981_v49 }
 0x161   : > { %677 = vmatmul.mubr.bf16.gmra.mxu1 %v983_v50 }
 0x1f1   : > { %v859_v51 = vpop.f32.mrf.mxu1  ;;  %v853_v52 = vpop.f32.mrf.mxu0 }
 0x1f3   : > { %v860_v54 = vpop.f32.mrf.mxu1  ;;  %v854_v55 = vpop.f32.mrf.mxu0 }
 0x1f4   : > { %v861_v56 = vadd.f32 %v860_v54, %v859_v51  ;;  %v855_v57 = vadd.f32 %v854_v55, %v853_v52 }
 0x1f5   : > { %v862_v58 = vpop.f32.mrf.mxu1  ;;  %v856_v59 = vpop.f32.mrf.mxu0 }
 0x1f6   : > { %v631_v60 = vadd.f32 %v861_v56, %v1179_v53  ;;  %v623_v61 = vadd.f32 %v855_v57, %v1179_v53 }
 0x1f7   : > { %v863_v62 = vpop.f32.mrf.mxu1  ;;  %v857_v63 = vpop.f32.mrf.mxu0 }
 0x1f8   : > { %v687_v0 = vmax.f32 %v631_v60, 0.0  ;;  %v864_v1 = vadd.f32 %v863_v62, %v862_v58  ;;  %v685_v2 = vmax.f32 %v623_v61, 0.0  ;;  %v858_v3 = vadd.f32 %v857_v63, %v856_v59 }
 0x1f9   : > { %v865_v4 = vpop.f32.mrf.mxu1 }
 0x1fa   : > { %704 = vst.msk [vmem:[%s1188_s19 + $0x10] sm:$0xff] %vm701_vm2, %v687_v0  ;;  %v634_v5 = vadd.f32 %v864_v1, %v1179_v53  ;;  %702 = vst.msk [vmem:[%s1188_s19] sm:$0xff] %vm701_vm2, %v685_v2  ;;  %v626_v6 = vadd.f32 %v858_v3, %v1179_v53 }
 0x1fb   : > { %v866_v7 = vpop.f32.mrf.mxu1 }
 0x1fc   : > { %v688_v8 = vmax.f32 %v634_v5, 0.0  ;;  %v867_v9 = vadd.f32 %v866_v7, %v865_v4  ;;  %v686_v10 = vmax.f32 %v626_v6, 0.0 }
 0x1fd   : > { %v868_v11 = vpop.f32.mrf.mxu1 }
 0x1fe   : > { %705 = vst.msk [vmem:[%s1188_s19 + $0x18] sm:$0xff] %vm701_vm2, %v688_v8  ;;  %v639_v12 = vadd.f32 %v867_v9, %v1179_v53  ;;  %703 = vst.msk [vmem:[%s1188_s19 + $0x8] sm:$0xff] %vm701_vm2, %v686_v10 }
 0x1ff   : > { %v869_v13 = vpop.f32.mrf.mxu1 }
 0x200   : > { %v689_v14 = vmax.f32 %v639_v12, 0.0  ;;  %v870_v15 = vadd.f32 %v869_v13, %v868_v11 }
 0x201   : > { %v871_v16 = vpop.f32.mrf.mxu1 }
 0x202   : > { %706 = vst.msk [vmem:[%s1188_s19 + $0x20] sm:$0xff] %vm701_vm2, %v689_v14  ;;  %v642_v17 = vadd.f32 %v870_v15, %v1179_v53 }
 0x203   : > { %v872_v18 = vpop.f32.mrf.mxu1 }
 0x204   : > { %v690_v19 = vmax.f32 %v642_v17, 0.0  ;;  %v873_v20 = vadd.f32 %v872_v18, %v871_v16 }
 0x205   : > { %v874_v21 = vpop.f32.mrf.mxu1 }
 0x206   : > { %707 = vst.msk [vmem:[%s1188_s19 + $0x28] sm:$0xff] %vm701_vm2, %v690_v19  ;;  %v647_v22 = vadd.f32 %v873_v20, %v1179_v53 }
 0x207   : > { %v875_v23 = vpop.f32.mrf.mxu1 }
 0x208   : > { %v691_v24 = vmax.f32 %v647_v22, 0.0  ;;  %v876_v25 = vadd.f32 %v875_v23, %v874_v21 }
 0x209   : > { %v877_v26 = vpop.f32.mrf.mxu1 }
 0x20a   : > { %708 = vst.msk [vmem:[%s1188_s19 + $0x30] sm:$0xff] %vm701_vm2, %v691_v24  ;;  %v650_v27 = vadd.f32 %v876_v25, %v1179_v53 }
 0x20b   : > { %v878_v28 = vpop.f32.mrf.mxu1 }
 0x20c   : > { %v692_v29 = vmax.f32 %v650_v27, 0.0  ;;  %v879_v30 = vadd.f32 %v878_v28, %v877_v26 }
 0x20d   : > { %v880_v31 = vpop.f32.mrf.mxu1 }
 0x20e   : > { %709 = vst.msk [vmem:[%s1188_s19 + $0x38] sm:$0xff] %vm701_vm2, %v692_v29  ;;  %v655_v32 = vadd.f32 %v879_v30, %v1179_v53 }
 0x20f   : > { %v881_v33 = vpop.f32.mrf.mxu1 }
 0x210   : > { %v693_v34 = vmax.f32 %v655_v32, 0.0  ;;  %v882_v35 = vadd.f32 %v881_v33, %v880_v31 }
 0x211   : > { %v883_v36 = vpop.f32.mrf.mxu1 }
 0x212   : > { %710 = vst.msk [vmem:[%s1188_s19 + $0x40] sm:$0xff] %vm701_vm2, %v693_v34  ;;  %v658_v37 = vadd.f32 %v882_v35, %v1179_v53 }
 0x213   : > { %v884_v38 = vpop.f32.mrf.mxu1 }
 0x214   : > { %v694_v39 = vmax.f32 %v658_v37, 0.0  ;;  %v885_v40 = vadd.f32 %v884_v38, %v883_v36 }
 0x215   : > { %v886_v41 = vpop.f32.mrf.mxu1 }
 0x216   : > { %711 = vst.msk [vmem:[%s1188_s19 + $0x48] sm:$0xff] %vm701_vm2, %v694_v39  ;;  %v663_v42 = vadd.f32 %v885_v40, %v1179_v53 }
 0x217   : > { %v887_v43 = vpop.f32.mrf.mxu1 }
 0x218   : > { %v695_v44 = vmax.f32 %v663_v42, 0.0  ;;  %v888_v45 = vadd.f32 %v887_v43, %v886_v41 }
 0x219   : > { %v889_v46 = vpop.f32.mrf.mxu1 }
 0x21a   : > { %712 = vst.msk [vmem:[%s1188_s19 + $0x50] sm:$0xff] %vm701_vm2, %v695_v44  ;;  %v666_v47 = vadd.f32 %v888_v45, %v1179_v53 }
 0x21b   : > { %v890_v48 = vpop.f32.mrf.mxu1 }
 0x21c   : > { %v696_v49 = vmax.f32 %v666_v47, 0.0  ;;  %v891_v50 = vadd.f32 %v890_v48, %v889_v46 }
 0x21d   : > { %v892_v51 = vpop.f32.mrf.mxu1 }
 0x21e   : > { %713 = vst.msk [vmem:[%s1188_s19 + $0x58] sm:$0xff] %vm701_vm2, %v696_v49  ;;  %v671_v52 = vadd.f32 %v891_v50, %v1179_v53 }
 0x21f   : > { %v893_v54 = vpop.f32.mrf.mxu1 }
 0x220   : > { %v697_v55 = vmax.f32 %v671_v52, 0.0  ;;  %v894_v56 = vadd.f32 %v893_v54, %v892_v51 }
 0x221   : > { %v895_v57 = vpop.f32.mrf.mxu1 }
 0x222   : > { %714 = vst.msk [vmem:[%s1188_s19 + $0x60] sm:$0xff] %vm701_vm2, %v697_v55  ;;  %v674_v58 = vadd.f32 %v894_v56, %v1179_v53 }
 0x223   : > { %v896_v59 = vpop.f32.mrf.mxu1 }
 0x224   : > { %v698_v60 = vmax.f32 %v674_v58, 0.0  ;;  %v897_v61 = vadd.f32 %v896_v59, %v895_v57 }
 0x225   : > { %v898_v62 = vpop.f32.mrf.mxu1 }
 0x226   : > { %715 = vst.msk [vmem:[%s1188_s19 + $0x68] sm:$0xff] %vm701_vm2, %v698_v60  ;;  %v679_v63 = vadd.f32 %v897_v61, %v1179_v53 }
 0x227   : > { %v899_v0 = vpop.f32.mrf.mxu1 }
 0x228   : > { %v699_v1 = vmax.f32 %v679_v63, 0.0  ;;  %v900_v2 = vadd.f32 %v899_v0, %v898_v62 }
 0x22a   : > { %716 = vst.msk [vmem:[%s1188_s19 + $0x70] sm:$0xff] %vm701_vm2, %v699_v1  ;;  %v682_v3 = vadd.f32 %v900_v2, %v1179_v53 }
 0x22c   : > { %v700_v4 = vmax.f32 %v682_v3, 0.0 }
 0x22e   : > { %717 = vst.msk [vmem:[%s1188_s19 + $0x78] sm:$0xff] %vm701_vm2, %v700_v4 }
 0x22f PF: > { %s14_s15 = sadd.s32 1, %s990_s15  }
 0x230   : > { %p11_p4 = scmp.ge.s32.totalorder %s14_s15, 4  }
 0x232   :  { %13 = sbr.rel (!%p11_p4) target bundleno = 1 (0x1), region = 66 }

// kernel: edge_gcn_forward.5
= control target key start
LH: loop header
LB: loop body
LE: loop exit
PB: predicated region body
PF: predicated region fallthrough
CT: control target
= control target key end

     0   :  { %s782_s0 = inlined_call_operand.vmem [shape: f32[16,512], index: 0, kind: input, shape index: {}]   ;;  %s783_s1 = inlined_call_operand.vmem [shape: f32[16,512], index: 1, kind: input, shape index: {}]   ;;  %s784_s2 = inlined_call_operand.vmem [shape: f32[16,1], index: 2, kind: input, shape index: {}]   ;;  %s785_s3 = inlined_call_operand.vmem [shape: f32[16,1], index: 3, kind: input, shape index: {}]   ;;  %s786_s4 = inlined_call_operand.<no memory space> [shape: f32[1,1], index: 4, kind: input, shape index: {}]   ;;  %s787_s5 = inlined_call_operand.hbm [shape: f32[1,512], index: 5, kind: output, shape index: {}]  }
   0x1   :  { %v10_v0 = vstv %s786_s4 }
   0x2   :  { %11 = vst [vmem:[#allocation2] sm:$0x1] %v10_v0 }
   0x3   :  { %12 = vsyncpa [#allocation6], 0 }
   0x4   :  { %14 = vsyncpa [#allocation6 + $0x1], 0  ;;  %s660_s20 = smov 0   ;;  %s662_s21 = smov 0  }
   0x5   :  { %s664_s22 = smov 0   ;;  %s666_s23 = smov 0  }
   0x6 LB: > { %s495_s4 = sadd.s32 4294967295, %s622_s23   ;;  %s496_s24 = sadd.s32 4294967294, %s622_s23   ;;  %s622_s23 = sphi %s666_s23, %s796_s23   ;;  %s618_s22 = sphi %s664_s22, %s795_s22   ;;  %s614_s21 = sphi %s662_s21, %s794_s21   ;;  %s610_s20 = sphi %s660_s20, %s793_s20  }
   0x7   : > { %s683_s25 = sadd.s32 1, %s622_s23   ;;  %s27_s26 = sadd.s32 1, %s618_s22 }
   0x8   : > { %s24_s27 = ssub.s32 %s622_s23, %s683_s25  ;;  %p34_p0 = scmp.ne.s32.totalorder %s618_s22, %s614_s21 }
   0x9   : > { %p25_p1 = scmp.eq.s32.totalorder %s24_s27, 0  ;;  %p35_p2 = scmp.eq.s32.totalorder %s622_s23, 0 }
   0xa   : > { %p153_p3 = scmp.eq.s32.totalorder %s495_s4, 1  ;;  %p158_p4 = scmp.ne.s32.totalorder %s614_s21, %s610_s20 }
   0xb   : > { %s696_s28 = scalar_select %p25_p1, %s618_s22, %s27_s26  }
   0xc   : > { %p698_p5 = por %p35_p2, %p34_p0  ;;  %p702_p6 = por %p153_p3, %p34_p0 }
   0xd   : > { %p159_p7 = scmp.eq.s32.totalorder %s496_s24, 1  ;;  %p788_p9 = scmp.ge.s32.totalorder %s622_s23, 2 }
   0xf   : > { %p706_p8 = por %p159_p7, %p158_p4  ;;  %184 = sbr.rel (%p788_p9) target bundleno = 32 (0x20), region = 28 }
  0x14   : > { %187 = sbr.rel (!%p698_p5) target bundleno = 26 (0x1a), region = 32  ;;  %s189_s7 = sand.u32 (%p698_p5), 1, %s618_s22  }
  0x15   : > { %s514_s8 = sshll.u32 (%p698_p5), %s622_s23, 4  ;;  %s499_s9 = sshll.u32 (%p698_p5), %s189_s7, 5 }
  0x16   : > { %s194_s12 = scalar_lea.vmem (%p698_p5), %s782_s0, %s514_s8  ;;  %s191_s13 = scalar_lea.vmem (%p698_p5), [#allocation3], %s499_s9 }
  0x17   : > { %v207_v1 = vld [vmem:[%s194_s12] sm:$0xff] (%p698_p5)  ;;  %v209_v2 = vld [vmem:[%s194_s12 + $0x8] sm:$0xff] (%p698_p5) }
  0x18   : > { %v211_v3 = vld [vmem:[%s194_s12 + $0x20] sm:$0xff] (%p698_p5)  ;;  %208 = vst [vmem:[%s191_s13] sm:$0xff] (%p698_p5), %v207_v1  ;;  %210 = vst [vmem:[%s191_s13 + $0x8] sm:$0xff] (%p698_p5), %v209_v2  ;;  %v213_v4 = vld [vmem:[%s194_s12 + $0x28] sm:$0xff] (%p698_p5) }
  0x19   : > { %212 = vst [vmem:[%s191_s13 + $0x10] sm:$0xff] %v211_v3  ;;  %214 = vst [vmem:[%s191_s13 + $0x18] sm:$0xff] %v213_v4 }
  0x1a PF: > { %220 = sbr.rel (!%p698_p5) target bundleno = 32 (0x20), region = 55  ;;  %s222_s14 = sand.u32 (%p698_p5), 1, %s618_s22  }
  0x1b   : > { %s515_s15 = sshll.u32 (%p698_p5), %s622_s23, 4  ;;  %s502_s16 = sshll.u32 (%p698_p5), %s222_s14, 5 }
  0x1c   : > { %s227_s19 = scalar_lea.vmem (%p698_p5), %s783_s1, %s515_s15  ;;  %s224_s24 = scalar_lea.vmem (%p698_p5), [#allocation4], %s502_s16 }
  0x1d   : > { %v240_v5 = vld [vmem:[%s227_s19] sm:$0xff] (%p698_p5)  ;;  %v242_v6 = vld [vmem:[%s227_s19 + $0x8] sm:$0xff] (%p698_p5) }
  0x1e   : > { %v244_v7 = vld [vmem:[%s227_s19 + $0x20] sm:$0xff] (%p698_p5)  ;;  %241 = vst [vmem:[%s224_s24] sm:$0xff] (%p698_p5), %v240_v5  ;;  %243 = vst [vmem:[%s224_s24 + $0x8] sm:$0xff] (%p698_p5), %v242_v6  ;;  %v246_v8 = vld [vmem:[%s227_s19 + $0x28] sm:$0xff] (%p698_p5) }
  0x1f   : > { %245 = vst [vmem:[%s224_s24 + $0x10] sm:$0xff] %v244_v7  ;;  %247 = vst [vmem:[%s224_s24 + $0x18] sm:$0xff] %v246_v8 }
  0x20 PF: > { %p505_p10 = scmp.ge.s32.totalorder %s622_s23, 1  ;;  %p252_p11 = scmp.lt.s32.totalorder %s622_s23, 3 }
  0x22   : > { %p253_p12 = pnand %p505_p10, %p252_p11 }
  0x23   : > { %s742_s12 = sand.u32 (!%p253_p12), 1, %s614_s21   ;;  %s516_s18 = sshll.u32 (!%p253_p12), %s495_s4, 5 }
  0x24   : > { %256 = sbr.rel (%p253_p12) target bundleno = 210 (0xd2), region = 78  ;;  %s506_s13 = sshll.u32 (!%p253_p12), %s742_s12, 5 }
  0x25   : > { %s268_s14 = scalar_lea.vmem (!%p253_p12), [#allocation4], %s506_s13  ;;  %s261_s15 = scalar_lea.vmem (!%p253_p12), [#allocation3], %s506_s13 }
  0x26   : > { %s508_s17 = sshll.u32 (!%p253_p12), %s742_s12, 1  ;;  %s411_s29 = scalar_lea.hbm (!%p253_p12), %s787_s5, %s516_s18 }
  0x27   : > { %s296_s19 = scalar_lea.vmem (!%p253_p12), [#allocation5], %s508_s17  ;;  %s399_s7 = scalar_lea.sflag (!%p253_p12), [#allocation6], %s742_s12 }
  0x28   : > { %s413_s24 = sshll.u32 (!%p253_p12), %s296_s19, 4  ;;  %s626_s9 = smov (!%p253_p12), [#allocation5]   ;;  %s414_s24 = int_to_ptr.vmem [resolvable:$true] %s413_s24 }
  0x29   : > { %v310_v9 = vld [vmem:[%s785_s3] sm:$0xff]  ;;  %v624_v11 = vmov 0   ;;  %v311_v13 = vld [vmem:[%s785_s3 + $0x8] sm:$0xff]  ;;  %v306_v21 = vld [vmem:[%s268_s14 + $0x10] sm:$0xff]  ;;  %v625_v51 = vmov 1966171168   ;;  %v381_v53 = vlaneseq }
  0x2a   : > { %v308_v10 = vld [vmem:[%s784_s2] sm:$0xff]  ;;  %561 = vset.pattern.permute.xlu1 %v624_v11  ;;  %560 = vset.pattern.permute.xlu0 %v624_v11  ;;  %v309_v14 = vld [vmem:[%s784_s2 + $0x8] sm:$0xff]  ;;  %v302_v23 = vld [vmem:[%s261_s15 + $0x10] sm:$0xff]  ;;  %v379_v52 = vunpack.c.l.s4 %v625_v51  ;;  %s562_s8 = scalar_lea.vmem %s414_s24, 32  ;;  %s566_s10 = sshll.u32 %s626_s9, 4  ;;  %s567_s10 = int_to_ptr.vmem [resolvable:$false] %s566_s10 }
  0x2b   : > { %v312_v12 = vld [vmem:[#allocation2] sm:$0x1]  ;;  %343 = vperm.xlu1 %561, %v310_v9   ;;  %315 = vperm.xlu0 %560, %v308_v10   ;;  %v304_v16 = vld [vmem:[%s268_s14] sm:$0xff]  ;;  %v305_v17 = vld [vmem:[%s268_s14 + $0x8] sm:$0xff]  ;;  %v382_v63 = vshrl.u32 %v381_v53, 7  ;;  %vm395_vm0 = vcmp.lt.s32.totalorder %v381_v53, 256  ;;  %p563_p13 = scmp.ne.s32.totalorder %s414_s24, %s562_s8  ;;  %p569_p2 = scmp.lt.s32.totalorder %s414_s24, %s567_s10 }
  0x2c   : > { %517 = vpush %v312_v12  ;;  %v300_v19 = vld [vmem:[%s261_s15] sm:$0xff]  ;;  %v301_v20 = vld [vmem:[%s261_s15 + $0x8] sm:$0xff]  ;;  %v307_v22 = vld [vmem:[%s268_s14 + $0x18] sm:$0xff]  ;;  %v380_v62 = vunpack.c.0.s8 %v379_v52  ;;  %s568_s4 = scalar_lea.vmem %s567_s10, 64 }
  0x2d   : > { %v303_v24 = vld [vmem:[%s261_s15 + $0x18] sm:$0xff]  ;;  %p564_p0 = pnand %p563_p13, %p702_p6  ;;  %p570_p3 = scmp.lt.s32.totalorder %s568_s4, %s562_s8 }
  0x2e   : > { %v383_v9 = vsub.s32 %v380_v62, %v382_v63 }
  0x2f   : > { %348 = vperm.xlu1 %561, %v311_v13   ;;  %320 = vperm.xlu0 %560, %v309_v14   ;;  %p565_p1 = pneg %p564_p0  ;;  %p571_p4 = por %p570_p3, %p569_p2 }
  0x31   : > { %p572_p5 = pnand %p571_p4, %p565_p1 }
  0x5d   : > { %s518_s16 = spop %517 }
  0x5e   : > { %v372_v4 = vstv %s518_s16 }
  0xa6   : > { %v344_v15 = vpop.permute.xlu1 %343  ;;  %v316_v18 = vpop.permute.xlu0 %315 }
  0xa7   : > { %v351_v25 = vmul.f32 %v344_v15, %v304_v16  ;;  %v352_v26 = vmul.f32 %v344_v15, %v305_v17  ;;  %v323_v27 = vmul.f32 %v316_v18, %v300_v19  ;;  %v324_v28 = vmul.f32 %v316_v18, %v301_v20 }
  0xaa   : > { %v349_v29 = vpop.permute.xlu1 %348  ;;  %v321_v30 = vpop.permute.xlu0 %320 }
  0xab   : > { %v353_v31 = vmul.f32 %v349_v29, %v306_v21  ;;  %v354_v32 = vmul.f32 %v349_v29, %v307_v22  ;;  %v325_v33 = vmul.f32 %v321_v30, %v302_v23  ;;  %v326_v34 = vmul.f32 %v321_v30, %v303_v24 }
  0xad   : > { %v355_v35 = vadd.f32 %v353_v31, %v351_v25  ;;  %v362_v36 = vadd.f32 %v354_v32, %v352_v26  ;;  %v327_v37 = vadd.f32 %v325_v33, %v323_v27  ;;  %v334_v38 = vadd.f32 %v326_v34, %v324_v28 }
  0xaf   : > { %v356_v39 = vrot.slane %v355_v35, 4  ;;  %v363_v40 = vrot.slane %v362_v36, 4  ;;  %v328_v41 = vrot.slane %v327_v37, 4  ;;  %v335_v42 = vrot.slane %v334_v38, 4 }
  0xb1   : > { %v357_v43 = vadd.f32 %v356_v39, %v355_v35  ;;  %v364_v44 = vadd.f32 %v363_v40, %v362_v36  ;;  %v329_v45 = vadd.f32 %v328_v41, %v327_v37  ;;  %v336_v46 = vadd.f32 %v335_v42, %v334_v38 }
  0xb3   : > { %v358_v47 = vrot.slane %v357_v43, 2  ;;  %v365_v48 = vrot.slane %v364_v44, 2  ;;  %v330_v49 = vrot.slane %v329_v45, 2  ;;  %v337_v50 = vrot.slane %v336_v46, 2 }
  0xb5   : > { %v359_v54 = vadd.f32 %v358_v47, %v357_v43  ;;  %v366_v55 = vadd.f32 %v365_v48, %v364_v44  ;;  %v331_v56 = vadd.f32 %v330_v49, %v329_v45  ;;  %v338_v57 = vadd.f32 %v337_v50, %v336_v46 }
  0xb7   : > { %v332_v58 = vrot.slane %v331_v56, 1  ;;  %v339_v59 = vrot.slane %v338_v57, 1  ;;  %v360_v60 = vrot.slane %v359_v54, 1  ;;  %v367_v61 = vrot.slane %v366_v55, 1 }
  0xb9   : > { %v333_v0 = vadd.f32 %v332_v58, %v331_v56  ;;  %v340_v1 = vadd.f32 %v339_v59, %v338_v57  ;;  %v361_v2 = vadd.f32 %v360_v60, %v359_v54  ;;  %v368_v3 = vadd.f32 %v367_v61, %v366_v55 }
  0xbb   : > { %v369_v5 = vadd.f32 %v361_v2, %v333_v0  ;;  %v370_v6 = vadd.f32 %v368_v3, %v340_v1 }
  0xbd   : > { %v373_v7 = vadd.f32 %v372_v4, %v369_v5  ;;  %v374_v8 = vadd.f32 %v372_v4, %v370_v6 }
  0xbf   : > { %v377_v10 = vcombine.low %v373_v7, %v374_v8 }
  0xc1   : > { %v384_v11 = vrot.slane %v377_v10, %v383_v9 }
  0xc3   : > { %v391_v12 = vrot.slane %v384_v11, %v383_v9 }
  0xc5   : > { %397 = vst.msk [vmem:[%s296_s19] sm:$0x3] %vm395_vm0, %v391_v12 }
  0xc6   : > { %575 = shalt.err (!%p572_p5)
}
  0xc7   : > { %s576_s11 = scalar_lea.hbm %s411_s29, 32  ;;  %s580_s14 = scalar_lea.hbm %s787_s5, 64 }
  0xc8   : > { %p577_p7 = scmp.ne.s32.totalorder %s411_s29, %s576_s11  ;;  %p581_p12 = scmp.lt.s32.totalorder %s411_s29, %s787_s5 }
  0xc9   : > { %p582_p13 = scmp.lt.s32.totalorder %s580_s14, %s576_s11 }
  0xca   : > { %p578_p10 = pnand %p577_p7, %p702_p6 }
  0xcb   : > { %p583_p0 = por %p582_p13, %p581_p12 }
  0xcc   : > { %p579_p11 = pneg %p578_p10 }
  0xce   : > { %p584_p9 = pnand %p583_p0, %p579_p11 }
  0xd0   : > { %587 = shalt.err (!%p584_p9)
}
  0xd1   : > { %519 = dma.vmem_to_hbm [thread:$0]  (%p702_p6), %s414_s24, 32, %s411_s29, %s399_s7  }
  0xd2 PF: > { %s425_s17 = sand.u32 1, %s610_s20   ;;  %p792_p1 = scmp.ge.s32.totalorder %s622_s23, 2 }
  0xd3   : > { %s426_s18 = scalar_lea.sflag [#allocation6], %s425_s17 }
  0xd4   : > { %p522_p2 = pnand %p792_p1, %p706_p8 }
  0xd6   : > { %p523_p3 = pneg %p522_p2 }
  0xd8   : > { %605 = dma.done.wait (%p523_p3), %s426_s18, 32  }
  0xd9   : > { %607 = vsyncadd (%p523_p3), %s426_s18, 4294967264  ;;  %p17_p9 = scmp.ge.s32.totalorder %s683_s25, 4   ;;  %s793_s20 = smov %s614_s21 }
  0xda   : > { %s794_s21 = smov %s618_s22  ;;  %s795_s22 = smov %s696_s28 }
  0xdb   : > { %s796_s23 = smov %s683_s25  ;;  %19 = sbr.rel (!%p17_p9) target bundleno = 6 (0x6), region = 134 }
  0xe0   :  { %431 = vsyncpa [#allocation6], 1 }
  0xe1   :  { %433 = vsyncpa [#allocation6 + $0x1], 1 }

</bundles_post_ra>
